<compile_context>
chip_gen: v6e
topology: v6e:2x2x1
jax: 0.10.0
libtpu: 0.0.40
codegen_flags: <defaults>
</compile_context>

<pallas_src>
import functools

import jax
import jax.numpy as jnp
from jax import lax
from jax.experimental import pallas as pl
from jax.experimental.pallas import tpu as pltpu


def _round_up(x, m):
    return (x + m - 1) // m * m


def _sympnet_kernel(a_ref, p_ref, q_ref, wT_ref, ws_ref, lb_ref, bias_ref,
                    p_out, q_out, *, num_layers, unroll_layers):
    """One batch tile of rows; weights/biases are VMEM-resident across the grid."""
    mm_dtype = wT_ref.dtype                     # f32 or bf16 matmul operands
    p = p_ref[...]                              # (TB, N) f32
    q = q_ref[...]

    def layer(l, carry):
        p, q = carry
        a = a_ref[2 * l]                        # scalars from 1-D SMEM
        b = a_ref[2 * l + 1]
        z0 = a * p + b * q                                          # (TB, N)
        h = jnp.dot(z0.astype(mm_dtype), wT_ref[l],
                    preferred_element_type=jnp.float32)             # (TB, M)
        h = jnp.abs(h + lb_ref[l])                                  # abs activation
        z = jnp.dot(h.astype(mm_dtype), ws_ref[l],
                    preferred_element_type=jnp.float32)             # (TB, N)
        z = z + bias_ref[l]
        return p + b * z, q - a * z

    if unroll_layers:
        for l in range(num_layers):
            p, q = layer(l, (p, q))
    else:
        p, q = lax.fori_loop(0, num_layers, layer, (p, q))

    p_out[...] = p
    q_out[...] = q


def prepare_sympnet_params(a_vals, W, lin_bias, d, biases, *,
                           matmul_dtype=jnp.bfloat16):
    """Hoisted, loop-invariant parameter transforms (do this once per integrator)."""
    L, M, N = W.shape
    w_T = jnp.transpose(W, (0, 2, 1)).astype(matmul_dtype)     # (L, N, M)
    w_s = (d * W).astype(matmul_dtype)                         # (L, M, N)
    lb = lin_bias.astype(jnp.float32).reshape(L, 1, M)         # (L, 1, M)
    bs = biases.astype(jnp.float32).reshape(L, 1, N)           # (L, 1, N)
    a_flat = a_vals.astype(jnp.float32).reshape(-1)            # (2L,) -> 1-D SMEM
    return a_flat, w_T, w_s, lb, bs


def sympnet_forward(p, q, params, *, tile_b=None, unroll_layers=None):
    a_flat, w_T, w_s, lb, bs = params
    B, N = p.shape
    L = w_T.shape[0]
    M = w_T.shape[2]
    f32 = jnp.float32

    # Batch tiling: multiple of 8 (f32 sublane), up to 512 rows, and >= 2 grid
    # steps when possible so v7x's two TensorCores both get work.
    if tile_b is None:
        tile_b = 8 if B <= 8 else min(512, _round_up(pl.cdiv(B, 2), 8))
    B_pad = _round_up(B, tile_b)

    p_in = p.astype(f32)
    q_in = q.astype(f32)
    if B_pad != B:   # pad only the few trailing batch rows (sliced off at the end)
        p_in = jnp.zeros((B_pad, N), f32).at[:B].set(p_in)
        q_in = jnp.zeros((B_pad, N), f32).at[:B].set(q_in)

    if unroll_layers is None:
        unroll_layers = L <= 8

    kernel = functools.partial(_sympnet_kernel, num_layers=L,
                               unroll_layers=unroll_layers)

    mm_bytes = jnp.dtype(w_T.dtype).itemsize
    cost = pl.CostEstimate(
        flops=int(4 * B_pad * N * M * L),                      # 2 matmuls / layer
        transcendentals=0,
        bytes_accessed=int(4 * 4 * B_pad * N                   # p, q in + out (f32)
                           + 2 * L * M * N * mm_bytes          # W^T + d*W
                           + 4 * L * (M + N) + 4 * 2 * L))     # biases + a

    grid = (B_pad // tile_b,)

    out_p, out_q = pl.pallas_call(
        kernel,
        out_shape=(jax.ShapeDtypeStruct((B_pad, N), f32),
                   jax.ShapeDtypeStruct((B_pad, N), f32)),
        grid_spec=pltpu.PrefetchScalarGridSpec(
            num_scalar_prefetch=0,
            grid=grid,
            in_specs=[
                pl.BlockSpec(memory_space=pltpu.MemorySpace.SMEM),    # a (flat, 2L)
                pl.BlockSpec((tile_b, N), lambda i: (i, 0)),          # p tile
                pl.BlockSpec((tile_b, N), lambda i: (i, 0)),          # q tile
                pl.BlockSpec((L, N, M), lambda i: (0, 0, 0)),         # W^T (resident)
                pl.BlockSpec((L, M, N), lambda i: (0, 0, 0)),         # d*W (resident)
                pl.BlockSpec((L, 1, M), lambda i: (0, 0, 0)),         # lin bias
                pl.BlockSpec((L, 1, N), lambda i: (0, 0, 0)),         # out bias
            ],
            out_specs=(pl.BlockSpec((tile_b, N), lambda i: (i, 0)),
                       pl.BlockSpec((tile_b, N), lambda i: (i, 0))),
        ),
        compiler_params=pltpu.CompilerParams(
            dimension_semantics=("parallel",)),
        input_output_aliases={1: 0, 2: 1},     # p, q updated in place when donated
        cost_estimate=cost,
    )(a_flat, p_in, q_in, w_T, w_s, lb, bs)

    if B_pad != B:
        out_p = out_p[:B]
        out_q = out_q[:B]
    return out_p, out_q


def sympnet_reference(p, q, a_vals, W, lin_bias, d, biases):
    """Pure-JAX reference mirroring the PyTorch forward (full-precision matmuls)."""
    L = W.shape[0]
    hp = lax.Precision.HIGHEST
    for l in range(L):
        a, b = a_vals[l, 0], a_vals[l, 1]
        z = a * p + b * q
        z = jnp.abs(jnp.matmul(z, W[l].T, precision=hp) + lin_bias[l])
        z = jnp.matmul(z, d[l] * W[l], precision=hp) + biases[l]
        p = p + b * z
        q = q - a * z
    return p, q


def init_params(key, layer_sizes, N, h):
    """Deterministic parameter init matching the module's __init__ shapes."""
    L = len(layer_sizes)
    M = layer_sizes[0]
    assert all(m == M for m in layer_sizes), "stacked params assume equal layer sizes"
    kw, kd, ka = jax.random.split(key, 3)
    # xavier_normal_ for Linear(N, M): std = sqrt(2 / (fan_in + fan_out))
    std = (2.0 / (N + M)) ** 0.5
    W = std * jax.random.normal(kw, (L, M, N), dtype=jnp.float32)
    lin_bias = jnp.zeros((L, M), dtype=jnp.float32)       # nn.init.zeros_
    biases = jnp.zeros((L, N), dtype=jnp.float32)         # self.biases
    d = jax.random.normal(kd, (L, M, 1), dtype=jnp.float32)
    a_vals = h * jax.random.normal(ka, (L, 2), dtype=jnp.float32)
    return W, lin_bias, d, biases, a_vals


if __name__ == "__main__":
    # p, q in (B, N); B chosen so the batch grid has 2 steps (tile_b=128).
    B, N = 256, 16
    layer_sizes = [32, 32, 32]
    h = 0.1

    key = jax.random.PRNGKey(0)
    kp, kq, kparams = jax.random.split(key, 3)
    p = jax.random.normal(kp, (B, N), dtype=jnp.float32)
    q = jax.random.normal(kq, (B, N), dtype=jnp.float32)
    W, lin_bias, d, biases, a_vals = init_params(kparams, layer_sizes, N, h)

    p_ref_, q_ref_ = sympnet_reference(p, q, a_vals, W, lin_bias, d, biases)

    # f32 matmul operands: near-exact match with the full-precision reference.
    params_f32 = prepare_sympnet_params(a_vals, W, lin_bias, d, biases,
                                        matmul_dtype=jnp.float32)
    p_out, q_out = sympnet_forward(p, q, params_f32)
    jax.block_until_ready((p_out, q_out))
    assert p_out.shape == (B, N) and q_out.shape == (B, N)
    assert jnp.allclose(p_out, p_ref_, atol=1e-3, rtol=1e-3), "p mismatch (f32)"
    assert jnp.allclose(q_out, q_ref_, atol=1e-3, rtol=1e-3), "q mismatch (f32)"

    # bf16 matmul operands, f32 state/accumulation — the default MXU-native path.
    params_bf16 = prepare_sympnet_params(a_vals, W, lin_bias, d, biases)
    p_bf, q_bf = sympnet_forward(p, q, params_bf16)
    jax.block_until_ready((p_bf, q_bf))
    assert jnp.allclose(p_bf, p_ref_, atol=5e-2, rtol=5e-2), "p mismatch (bf16)"
    assert jnp.allclose(q_bf, q_ref_, atol=5e-2, rtol=5e-2), "q mismatch (bf16)"

    # fori_loop layer path (used for large L) + odd batch (exercises the batch
    # padding / slicing and keeps a 2-step grid).
    B2 = 100
    p2 = jax.random.normal(jax.random.PRNGKey(1), (B2, N), dtype=jnp.float32)
    q2 = jax.random.normal(jax.random.PRNGKey(2), (B2, N), dtype=jnp.float32)
    pr2, qr2 = sympnet_reference(p2, q2, a_vals, W, lin_bias, d, biases)
    p2_out, q2_out = sympnet_forward(p2, q2, params_f32, unroll_layers=False)
    jax.block_until_ready((p2_out, q2_out))
    assert p2_out.shape == (B2, N) and q2_out.shape == (B2, N)
    assert jnp.allclose(p2_out, pr2, atol=1e-3, rtol=1e-3), "p mismatch (fori_loop)"
    assert jnp.allclose(q2_out, qr2, atol=1e-3, rtol=1e-3), "q mismatch (fori_loop)"

    print("KERNEL_OK")
</pallas_src>

<mosaic_0001>
module attributes {stable_mosaic.version = 11 : i64} {
  func.func @_sympnet_kernel(%arg0: i32, %arg1: memref<6xf32, #tpu.memory_space<smem>>, %arg2: memref<128x16xf32, #tpu.memory_space<vmem>>, %arg3: memref<128x16xf32, #tpu.memory_space<vmem>>, %arg4: memref<3x16x32xf32, #tpu.memory_space<vmem>>, %arg5: memref<3x32x16xf32, #tpu.memory_space<vmem>>, %arg6: memref<3x1x32xf32, #tpu.memory_space<vmem>>, %arg7: memref<3x1x16xf32, #tpu.memory_space<vmem>>, %arg8: memref<128x16xf32, #tpu.memory_space<vmem>>, %arg9: memref<128x16xf32, #tpu.memory_space<vmem>>) attributes {dimension_semantics = [#tpu.dimension_semantics<parallel>], iteration_bounds = array<i64: 2>, scalar_prefetch = 0 : i64, scratch_operands = 0 : i64, tpu.core_type = #tpu.core_type<tc>, window_params = [{transform_indices = @transform_0, window_bounds = array<i64: 6>}, {transform_indices = @transform_1, window_bounds = array<i64: 128, 16>}, {transform_indices = @transform_2, window_bounds = array<i64: 128, 16>}, {pipeline_mode = #tpu.pipeline_mode<synchronous>, transform_indices = @transform_3, window_bounds = array<i64: 3, 16, 32>}, {pipeline_mode = #tpu.pipeline_mode<synchronous>, transform_indices = @transform_4, window_bounds = array<i64: 3, 32, 16>}, {pipeline_mode = #tpu.pipeline_mode<synchronous>, transform_indices = @transform_5, window_bounds = array<i64: 3, 1, 32>}, {pipeline_mode = #tpu.pipeline_mode<synchronous>, transform_indices = @transform_6, window_bounds = array<i64: 3, 1, 16>}, {transform_indices = @transform_7, window_bounds = array<i64: 128, 16>}, {transform_indices = @transform_8, window_bounds = array<i64: 128, 16>}]} {
    %c0 = arith.constant 0 : index
    %c0_0 = arith.constant 0 : index
    %0 = vector.load %arg2[%c0, %c0_0] : memref<128x16xf32, #tpu.memory_space<vmem>>, vector<128x16xf32>
    %c0_1 = arith.constant 0 : index
    %c0_2 = arith.constant 0 : index
    %1 = vector.load %arg3[%c0_1, %c0_2] : memref<128x16xf32, #tpu.memory_space<vmem>>, vector<128x16xf32>
    %c0_3 = arith.constant 0 : index
    %2 = memref.load %arg1[%c0_3] : memref<6xf32, #tpu.memory_space<smem>>
    %c1 = arith.constant 1 : index
    %3 = memref.load %arg1[%c1] : memref<6xf32, #tpu.memory_space<smem>>
    %4 = vector.broadcast %2 : f32 to vector<128x16xf32>
    %5 = arith.mulf %4, %0 : vector<128x16xf32>
    %6 = vector.broadcast %3 : f32 to vector<128x16xf32>
    %7 = arith.mulf %6, %1 : vector<128x16xf32>
    %8 = arith.addf %5, %7 : vector<128x16xf32>
    %c0_4 = arith.constant 0 : index
    %c0_5 = arith.constant 0 : index
    %c0_6 = arith.constant 0 : index
    %9 = vector.load %arg4[%c0_4, %c0_5, %c0_6] : memref<3x16x32xf32, #tpu.memory_space<vmem>>, vector<1x16x32xf32>
    %10 = vector.shape_cast %9 : vector<1x16x32xf32> to vector<16x32xf32>
    %cst = arith.constant dense<0.000000e+00> : vector<128x32xf32>
    %11 = tpu.matmul %8, %10, %cst {dimension_numbers = #tpu.dot_dimension_numbers<[1], [0], [0], [1], [0, 0, 1, 1], [], []>} : vector<128x16xf32>, vector<16x32xf32>, vector<128x32xf32> -> vector<128x32xf32>
    %c0_7 = arith.constant 0 : index
    %c0_8 = arith.constant 0 : index
    %c0_9 = arith.constant 0 : index
    %12 = vector.load %arg6[%c0_7, %c0_8, %c0_9] : memref<3x1x32xf32, #tpu.memory_space<vmem>>, vector<1x1x32xf32>
    %13 = vector.shape_cast %12 : vector<1x1x32xf32> to vector<1x32xf32>
    %14 = vector.broadcast %13 : vector<1x32xf32> to vector<128x32xf32>
    %15 = arith.addf %11, %14 : vector<128x32xf32>
    %16 = math.absf %15 : vector<128x32xf32>
    %c0_10 = arith.constant 0 : index
    %c0_11 = arith.constant 0 : index
    %c0_12 = arith.constant 0 : index
    %17 = vector.load %arg5[%c0_10, %c0_11, %c0_12] : memref<3x32x16xf32, #tpu.memory_space<vmem>>, vector<1x32x16xf32>
    %18 = vector.shape_cast %17 : vector<1x32x16xf32> to vector<32x16xf32>
    %cst_13 = arith.constant dense<0.000000e+00> : vector<128x16xf32>
    %19 = tpu.matmul %16, %18, %cst_13 {dimension_numbers = #tpu.dot_dimension_numbers<[1], [0], [0], [1], [0, 0, 1, 1], [], []>} : vector<128x32xf32>, vector<32x16xf32>, vector<128x16xf32> -> vector<128x16xf32>
    %c0_14 = arith.constant 0 : index
    %c0_15 = arith.constant 0 : index
    %c0_16 = arith.constant 0 : index
    %20 = vector.load %arg7[%c0_14, %c0_15, %c0_16] : memref<3x1x16xf32, #tpu.memory_space<vmem>>, vector<1x1x16xf32>
    %21 = vector.shape_cast %20 : vector<1x1x16xf32> to vector<1x16xf32>
    %22 = vector.broadcast %21 : vector<1x16xf32> to vector<128x16xf32>
    %23 = arith.addf %19, %22 : vector<128x16xf32>
    %24 = vector.broadcast %3 : f32 to vector<128x16xf32>
    %25 = arith.mulf %24, %23 : vector<128x16xf32>
    %26 = arith.addf %0, %25 : vector<128x16xf32>
    %27 = vector.broadcast %2 : f32 to vector<128x16xf32>
    %28 = arith.mulf %27, %23 : vector<128x16xf32>
    %29 = arith.subf %1, %28 : vector<128x16xf32>
    %c2 = arith.constant 2 : index
    %30 = memref.load %arg1[%c2] : memref<6xf32, #tpu.memory_space<smem>>
    %c3 = arith.constant 3 : index
    %31 = memref.load %arg1[%c3] : memref<6xf32, #tpu.memory_space<smem>>
    %32 = vector.broadcast %30 : f32 to vector<128x16xf32>
    %33 = arith.mulf %32, %26 : vector<128x16xf32>
    %34 = vector.broadcast %31 : f32 to vector<128x16xf32>
    %35 = arith.mulf %34, %29 : vector<128x16xf32>
    %36 = arith.addf %33, %35 : vector<128x16xf32>
    %c1_17 = arith.constant 1 : index
    %c0_18 = arith.constant 0 : index
    %c0_19 = arith.constant 0 : index
    %37 = vector.load %arg4[%c1_17, %c0_18, %c0_19] : memref<3x16x32xf32, #tpu.memory_space<vmem>>, vector<1x16x32xf32>
    %38 = vector.shape_cast %37 : vector<1x16x32xf32> to vector<16x32xf32>
    %cst_20 = arith.constant dense<0.000000e+00> : vector<128x32xf32>
    %39 = tpu.matmul %36, %38, %cst_20 {dimension_numbers = #tpu.dot_dimension_numbers<[1], [0], [0], [1], [0, 0, 1, 1], [], []>} : vector<128x16xf32>, vector<16x32xf32>, vector<128x32xf32> -> vector<128x32xf32>
    %c1_21 = arith.constant 1 : index
    %c0_22 = arith.constant 0 : index
    %c0_23 = arith.constant 0 : index
    %40 = vector.load %arg6[%c1_21, %c0_22, %c0_23] : memref<3x1x32xf32, #tpu.memory_space<vmem>>, vector<1x1x32xf32>
    %41 = vector.shape_cast %40 : vector<1x1x32xf32> to vector<1x32xf32>
    %42 = vector.broadcast %41 : vector<1x32xf32> to vector<128x32xf32>
    %43 = arith.addf %39, %42 : vector<128x32xf32>
    %44 = math.absf %43 : vector<128x32xf32>
    %c1_24 = arith.constant 1 : index
    %c0_25 = arith.constant 0 : index
    %c0_26 = arith.constant 0 : index
    %45 = vector.load %arg5[%c1_24, %c0_25, %c0_26] : memref<3x32x16xf32, #tpu.memory_space<vmem>>, vector<1x32x16xf32>
    %46 = vector.shape_cast %45 : vector<1x32x16xf32> to vector<32x16xf32>
    %cst_27 = arith.constant dense<0.000000e+00> : vector<128x16xf32>
    %47 = tpu.matmul %44, %46, %cst_27 {dimension_numbers = #tpu.dot_dimension_numbers<[1], [0], [0], [1], [0, 0, 1, 1], [], []>} : vector<128x32xf32>, vector<32x16xf32>, vector<128x16xf32> -> vector<128x16xf32>
    %c1_28 = arith.constant 1 : index
    %c0_29 = arith.constant 0 : index
    %c0_30 = arith.constant 0 : index
    %48 = vector.load %arg7[%c1_28, %c0_29, %c0_30] : memref<3x1x16xf32, #tpu.memory_space<vmem>>, vector<1x1x16xf32>
    %49 = vector.shape_cast %48 : vector<1x1x16xf32> to vector<1x16xf32>
    %50 = vector.broadcast %49 : vector<1x16xf32> to vector<128x16xf32>
    %51 = arith.addf %47, %50 : vector<128x16xf32>
    %52 = vector.broadcast %31 : f32 to vector<128x16xf32>
    %53 = arith.mulf %52, %51 : vector<128x16xf32>
    %54 = arith.addf %26, %53 : vector<128x16xf32>
    %55 = vector.broadcast %30 : f32 to vector<128x16xf32>
    %56 = arith.mulf %55, %51 : vector<128x16xf32>
    %57 = arith.subf %29, %56 : vector<128x16xf32>
    %c4 = arith.constant 4 : index
    %58 = memref.load %arg1[%c4] : memref<6xf32, #tpu.memory_space<smem>>
    %c5 = arith.constant 5 : index
    %59 = memref.load %arg1[%c5] : memref<6xf32, #tpu.memory_space<smem>>
    %60 = vector.broadcast %58 : f32 to vector<128x16xf32>
    %61 = arith.mulf %60, %54 : vector<128x16xf32>
    %62 = vector.broadcast %59 : f32 to vector<128x16xf32>
    %63 = arith.mulf %62, %57 : vector<128x16xf32>
    %64 = arith.addf %61, %63 : vector<128x16xf32>
    %c2_31 = arith.constant 2 : index
    %c0_32 = arith.constant 0 : index
    %c0_33 = arith.constant 0 : index
    %65 = vector.load %arg4[%c2_31, %c0_32, %c0_33] : memref<3x16x32xf32, #tpu.memory_space<vmem>>, vector<1x16x32xf32>
    %66 = vector.shape_cast %65 : vector<1x16x32xf32> to vector<16x32xf32>
    %cst_34 = arith.constant dense<0.000000e+00> : vector<128x32xf32>
    %67 = tpu.matmul %64, %66, %cst_34 {dimension_numbers = #tpu.dot_dimension_numbers<[1], [0], [0], [1], [0, 0, 1, 1], [], []>} : vector<128x16xf32>, vector<16x32xf32>, vector<128x32xf32> -> vector<128x32xf32>
    %c2_35 = arith.constant 2 : index
    %c0_36 = arith.constant 0 : index
    %c0_37 = arith.constant 0 : index
    %68 = vector.load %arg6[%c2_35, %c0_36, %c0_37] : memref<3x1x32xf32, #tpu.memory_space<vmem>>, vector<1x1x32xf32>
    %69 = vector.shape_cast %68 : vector<1x1x32xf32> to vector<1x32xf32>
    %70 = vector.broadcast %69 : vector<1x32xf32> to vector<128x32xf32>
    %71 = arith.addf %67, %70 : vector<128x32xf32>
    %72 = math.absf %71 : vector<128x32xf32>
    %c2_38 = arith.constant 2 : index
    %c0_39 = arith.constant 0 : index
    %c0_40 = arith.constant 0 : index
    %73 = vector.load %arg5[%c2_38, %c0_39, %c0_40] : memref<3x32x16xf32, #tpu.memory_space<vmem>>, vector<1x32x16xf32>
    %74 = vector.shape_cast %73 : vector<1x32x16xf32> to vector<32x16xf32>
    %cst_41 = arith.constant dense<0.000000e+00> : vector<128x16xf32>
    %75 = tpu.matmul %72, %74, %cst_41 {dimension_numbers = #tpu.dot_dimension_numbers<[1], [0], [0], [1], [0, 0, 1, 1], [], []>} : vector<128x32xf32>, vector<32x16xf32>, vector<128x16xf32> -> vector<128x16xf32>
    %c2_42 = arith.constant 2 : index
    %c0_43 = arith.constant 0 : index
    %c0_44 = arith.constant 0 : index
    %76 = vector.load %arg7[%c2_42, %c0_43, %c0_44] : memref<3x1x16xf32, #tpu.memory_space<vmem>>, vector<1x1x16xf32>
    %77 = vector.shape_cast %76 : vector<1x1x16xf32> to vector<1x16xf32>
    %78 = vector.broadcast %77 : vector<1x16xf32> to vector<128x16xf32>
    %79 = arith.addf %75, %78 : vector<128x16xf32>
    %80 = vector.broadcast %59 : f32 to vector<128x16xf32>
    %81 = arith.mulf %80, %79 : vector<128x16xf32>
    %82 = arith.addf %54, %81 : vector<128x16xf32>
    %83 = vector.broadcast %58 : f32 to vector<128x16xf32>
    %84 = arith.mulf %83, %79 : vector<128x16xf32>
    %85 = arith.subf %57, %84 : vector<128x16xf32>
    %c0_45 = arith.constant 0 : index
    %c0_46 = arith.constant 0 : index
    %86 = vector.load %arg8[%c0_45, %c0_46] : memref<128x16xf32, #tpu.memory_space<vmem>>, vector<128x16xf32>
    tpu.vector_store %arg8[%c0_45, %c0_46], %82 {strides = array<i32>} : memref<128x16xf32, #tpu.memory_space<vmem>>, vector<128x16xf32>,
    %c0_47 = arith.constant 0 : index
    %c0_48 = arith.constant 0 : index
    %87 = vector.load %arg9[%c0_47, %c0_48] : memref<128x16xf32, #tpu.memory_space<vmem>>, vector<128x16xf32>
    tpu.vector_store %arg9[%c0_47, %c0_48], %85 {strides = array<i32>} : memref<128x16xf32, #tpu.memory_space<vmem>>, vector<128x16xf32>,
    return
  }
  func.func @transform_0(%arg0: i32) -> i32 {
    %c0_i32 = arith.constant 0 : i32
    %c0_i32_0 = arith.constant 0 : i32
    return %c0_i32 : i32
  }
  func.func @transform_1(%arg0: i32) -> (i32, i32) {
    %c0_i32 = arith.constant 0 : i32
    %c0_i32_0 = arith.constant 0 : i32
    return %arg0, %c0_i32 : i32, i32
  }
  func.func @transform_2(%arg0: i32) -> (i32, i32) {
    %c0_i32 = arith.constant 0 : i32
    %c0_i32_0 = arith.constant 0 : i32
    return %arg0, %c0_i32 : i32, i32
  }
  func.func @transform_3(%arg0: i32) -> (i32, i32, i32) {
    %c0_i32 = arith.constant 0 : i32
    %c0_i32_0 = arith.constant 0 : i32
    %c0_i32_1 = arith.constant 0 : i32
    %c0_i32_2 = arith.constant 0 : i32
    return %c0_i32, %c0_i32_0, %c0_i32_1 : i32, i32, i32
  }
  func.func @transform_4(%arg0: i32) -> (i32, i32, i32) {
    %c0_i32 = arith.constant 0 : i32
    %c0_i32_0 = arith.constant 0 : i32
    %c0_i32_1 = arith.constant 0 : i32
    %c0_i32_2 = arith.constant 0 : i32
    return %c0_i32, %c0_i32_0, %c0_i32_1 : i32, i32, i32
  }
  func.func @transform_5(%arg0: i32) -> (i32, i32, i32) {
    %c0_i32 = arith.constant 0 : i32
    %c0_i32_0 = arith.constant 0 : i32
    %c0_i32_1 = arith.constant 0 : i32
    %c0_i32_2 = arith.constant 0 : i32
    return %c0_i32, %c0_i32_0, %c0_i32_1 : i32, i32, i32
  }
  func.func @transform_6(%arg0: i32) -> (i32, i32, i32) {
    %c0_i32 = arith.constant 0 : i32
    %c0_i32_0 = arith.constant 0 : i32
    %c0_i32_1 = arith.constant 0 : i32
    %c0_i32_2 = arith.constant 0 : i32
    return %c0_i32, %c0_i32_0, %c0_i32_1 : i32, i32, i32
  }
  func.func @transform_7(%arg0: i32) -> (i32, i32) {
    %c0_i32 = arith.constant 0 : i32
    %c0_i32_0 = arith.constant 0 : i32
    return %arg0, %c0_i32 : i32, i32
  }
  func.func @transform_8(%arg0: i32) -> (i32, i32) {
    %c0_i32 = arith.constant 0 : i32
    %c0_i32_0 = arith.constant 0 : i32
    return %arg0, %c0_i32 : i32, i32
  }
}

</mosaic_0001>

<bundles_post_ra>
// kernel: tpu_custom_call.1
= control target key start
LH: loop header
LB: loop body
LE: loop exit
PB: predicated region body
PF: predicated region fallthrough
CT: control target
= control target key end

     0   :  { %14 = vsyncpa [#allocation3], 0  ;;  %s2687_s27 = smov 0   ;;  %s3651_s0 = inlined_call_operand.vmem [shape: f32[6], index: 0, kind: input, shape index: {}]   ;;  %s3652_s1 = inlined_call_operand.vmem [shape: f32[256,16], index: 1, kind: input, shape index: {}, may-alias: {1,7}]   ;;  %s3653_s2 = inlined_call_operand.vmem [shape: f32[256,16], index: 2, kind: input, shape index: {}, may-alias: {2,8}]   ;;  %s3654_s3 = inlined_call_operand.vmem [shape: f32[3,16,32], index: 3, kind: input, shape index: {}]   ;;  %s3655_s4 = inlined_call_operand.vmem [shape: f32[3,32,16], index: 4, kind: input, shape index: {}]   ;;  %s3656_s5 = inlined_call_operand.vmem [shape: f32[3,1,32], index: 5, kind: input, shape index: {}]   ;;  %s3657_s6 = inlined_call_operand.vmem [shape: f32[3,1,16], index: 6, kind: input, shape index: {}]   ;;  %s3658_s7 = inlined_call_operand.vmem [shape: f32[256,16], index: 7, kind: output, shape index: {0}, may-alias: {1,7}]   ;;  %s3659_s8 = inlined_call_operand.vmem [shape: f32[256,16], index: 8, kind: output, shape index: {1}, may-alias: {2,8}]  }
   0x1 LB: > { %s2161_s28 = sadd.s32 4294967295, %s2639_s27   ;;  %p2163_p0 = scmp.ge.s32.totalorder %s2639_s27, 1  ;;  %s2639_s27 = sphi %s2687_s27, %s20_s27  }
   0x2   : > { %p234_p1 = scmp.lt.s32.totalorder %s2639_s27, 3  ;;  %s247_s9 = sshll.u32 %s3651_s0, 4  ;;  %s248_s9 = int_to_ptr.vmem [resolvable:$true] %s247_s9 }
   0x3   : > { %p2702_p3 = scmp.eq.s32.totalorder %s2161_s28, 0  ;;  %s2614_s12 = scalar_lea.vmem %s248_s9, 16 }
   0x4   : > { %p2698_p2 = pnand %p2163_p0, %p234_p1  ;;  %p2615_p6 = scmp.ne.s32.totalorder %s248_s9, %s2614_s12 }
   0x5   : > { %p2622_p10 = scmp.lt.s32.totalorder %s248_s9, %s248_s9  ;;  %p2623_p11 = scmp.lt.s32.totalorder %s2614_s12, %s2614_s12 }
   0x6   : > { %p2599_p4 = pneg %p2698_p2 }
   0x7   : > { %p2624_p12 = por %p2623_p11, %p2622_p10 }
   0x8   : > { %p2600_p5 = pnand %p2702_p3, %p2599_p4 }
   0xa   : > { %p2616_p7 = pneg %p2600_p5 }
   0xc   : > { %p2617_p8 = pnand %p2616_p7, %p2615_p6 }
   0xe   : > { %p2618_p9 = pneg %p2617_p8 }
  0x10   : > { %p2625_p13 = pnand %p2624_p12, %p2618_p9 }
  0x12   : > { %2628 = shalt.err (!%p2625_p13)
}
  0x13   : > { %s2641_s13 = smov [#allocation2]   ;;  %290 = sbr.rel (%p2698_p2) target bundleno = 1285 (0x505), region = 48 }
  0x14   : > { %2602 = dma.vmem_to_smem (!%p2600_p5), %s248_s9, 16, %s2641_s13, [#allocation3]  }
  0x18   : > { %2634 = dma.done.wait (%p2702_p3), [#allocation3], 16  }
  0x19   : > { %2636 = vsyncadd (%p2702_p3), [#allocation3], 4294967280 }
  0x1a   : > { %296 = sfence }
  0x1b   : > { %v444_v0 = vld [vmem:[%s3654_s3 + $0x8] sm:$0xff]  ;;  %v443_v1 = vld [vmem:[%s3654_s3] sm:$0xff]  ;;  %s2168_s18 = sshll.u32 %s2161_s28, 4  ;;  %s391_s19 = sld [smem:[#allocation2]]  ;;  %vm452_vm0 = vcmask 130048   ;;  %vm673_vm1 = vcmask 261120  }
  0x1c   : > { %2415 = vmatprep.subr.mxu0 %v444_v0  ;;  %p336_p0 = scmp.lt.s32.totalorder %s2168_s18, 31  ;;  %s2176_s20 = sld [smem:[#allocation2 + $0x1]] }
  0x1d   : > { %2416 = vmatpush3.msra.mxu0 %v444_v0  ;;  %s2211_s9 = sld [smem:[#allocation2 + $0x2]] }
  0x1e   : > { %2417 = vmatprep.subr.mxu0 %v443_v1  ;;  %s3663_s18 = smov (!%p336_p0, %s2168_s18), 31  ;;  %s2212_s10 = sld [smem:[#allocation2 + $0x3]] }
  0x1f   : > { %2418 = vmatpush3.msra.mxu0 %v443_v1  ;;  %s2722_s21 = sshll.u32 %s3663_s18, 3  ;;  %s2255_s29 = sld [smem:[#allocation2 + $0x4]] }
  0x20   : > { %s2728_s24 = scalar_lea.vmem %s3652_s1, %s2722_s21  ;;  %s2734_s28 = scalar_lea.vmem %s3653_s2, %s2722_s21 }
  0x21   : > { %v2736_v2 = vstv %s391_s19  ;;  %v2739_v3 = vld [vmem:[%s2728_s24] sm:$0xff]  ;;  %v2747_v6 = vld [vmem:[%s2728_s24 + $0x8] sm:$0xff]  ;;  %v2759_v11 = vld [vmem:[%s2728_s24 + $0x10] sm:$0xff]  ;;  %s2256_s30 = sld [smem:[#allocation2 + $0x5]]  ;;  %s3500_s17 = scalar_lea.vmem %s3658_s7, %s2722_s21 }
  0x22   : > { %v2742_v4 = vld [vmem:[%s2734_s28] sm:$0xff]  ;;  %v2744_v5 = vstv %s2176_s20  ;;  %v394_v7 = vmul.f32 %v2736_v2, %v2739_v3  ;;  %v2754_v9 = vld [vmem:[%s2734_s28 + $0x8] sm:$0xff]  ;;  %v395_v10 = vmul.f32 %v2736_v2, %v2747_v6  ;;  %v2762_v12 = vld [vmem:[%s2734_s28 + $0x10] sm:$0xff]  ;;  %v396_v14 = vmul.f32 %v2736_v2, %v2759_v11  ;;  %s3506_s20 = scalar_lea.vmem %s3659_s8, %s2722_s21 }
  0x23   : > { %v411_v8 = vmul.f32 %v2744_v5, %v2742_v4  ;;  %v412_v13 = vmul.f32 %v2744_v5, %v2754_v9  ;;  %v413_v15 = vmul.f32 %v2744_v5, %v2762_v12  ;;  %v2771_v16 = vld [vmem:[%s2728_s24 + $0x18] sm:$0xff]  ;;  %v2777_v18 = vld [vmem:[%s2728_s24 + $0x20] sm:$0xff]  ;;  %v2789_v24 = vld [vmem:[%s2728_s24 + $0x28] sm:$0xff] }
  0x24   : > { %v2774_v17 = vld [vmem:[%s2734_s28 + $0x18] sm:$0xff]  ;;  %v397_v20 = vmul.f32 %v2736_v2, %v2771_v16  ;;  %v2784_v22 = vld [vmem:[%s2734_s28 + $0x20] sm:$0xff]  ;;  %v398_v23 = vmul.f32 %v2736_v2, %v2777_v18  ;;  %v2792_v25 = vld [vmem:[%s2734_s28 + $0x28] sm:$0xff]  ;;  %v399_v32 = vmul.f32 %v2736_v2, %v2789_v24 }
  0x25   : > { %v427_v19 = vadd.f32 %v411_v8, %v394_v7  ;;  %v414_v21 = vmul.f32 %v2744_v5, %v2774_v17  ;;  %v428_v26 = vadd.f32 %v412_v13, %v395_v10  ;;  %v429_v27 = vadd.f32 %v413_v15, %v396_v14  ;;  %v2797_v29 = vld [vmem:[%s2728_s24 + $0x30] sm:$0xff]  ;;  %v2814_v37 = vld [vmem:[%s2728_s24 + $0x38] sm:$0xff]  ;;  %v2820_v39 = vld [vmem:[%s2728_s24 + $0x40] sm:$0xff] }
  0x26   : > { %v415_v28 = vmul.f32 %v2744_v5, %v2784_v22  ;;  %v2800_v30 = vld [vmem:[%s2734_s28 + $0x30] sm:$0xff]  ;;  %v416_v33 = vmul.f32 %v2744_v5, %v2792_v25  ;;  %v400_v35 = vmul.f32 %v2736_v2, %v2797_v29  ;;  %v2817_v38 = vld [vmem:[%s2734_s28 + $0x38] sm:$0xff]  ;;  %v2823_v40 = vld [vmem:[%s2734_s28 + $0x40] sm:$0xff]  ;;  %v401_v42 = vmul.f32 %v2736_v2, %v2814_v37 }
  0x27   : > { %2419 = vmatprep.mubr.msk.f32.mxu0 %vm452_vm0, %v427_v19  ;;  %v430_v31 = vadd.f32 %v414_v21, %v397_v20  ;;  %v417_v36 = vmul.f32 %v2744_v5, %v2800_v30  ;;  %v418_v43 = vmul.f32 %v2744_v5, %v2817_v38  ;;  %v402_v45 = vmul.f32 %v2736_v2, %v2820_v39  ;;  %v2836_v47 = vld [vmem:[%s2728_s24 + $0x48] sm:$0xff]  ;;  %v2842_v49 = vld [vmem:[%s2728_s24 + $0x50] sm:$0xff]  ;;  %v2858_v57 = vld [vmem:[%s2728_s24 + $0x58] sm:$0xff] }
  0x28   : > { %2420 = vmatmul.mubr.msk.f32.vlgmr.msra.gmra.mxu0 %vm452_vm0, %v428_v26  ;;  %v431_v34 = vadd.f32 %v415_v28, %v398_v23  ;;  %v432_v41 = vadd.f32 %v416_v33, %v399_v32  ;;  %v419_v46 = vmul.f32 %v2744_v5, %v2823_v40  ;;  %v2839_v48 = vld [vmem:[%s2734_s28 + $0x48] sm:$0xff]  ;;  %v2845_v50 = vld [vmem:[%s2734_s28 + $0x50] sm:$0xff]  ;;  %v403_v52 = vmul.f32 %v2736_v2, %v2836_v47  ;;  %v2861_v58 = vld [vmem:[%s2734_s28 + $0x58] sm:$0xff] }
  0x29   : > { %2422 = vmatprep.mubr.msk.f32.mxu0 %vm452_vm0, %v429_v27  ;;  %v433_v44 = vadd.f32 %v417_v36, %v400_v35  ;;  %v434_v51 = vadd.f32 %v418_v43, %v401_v42  ;;  %v420_v53 = vmul.f32 %v2744_v5, %v2839_v48  ;;  %v404_v55 = vmul.f32 %v2736_v2, %v2842_v49  ;;  %v2864_v59 = vld [vmem:[%s2728_s24 + $0x60] sm:$0xff]  ;;  %v2880_v8 = vld [vmem:[%s2728_s24 + $0x68] sm:$0xff]  ;;  %v2886_v13 = vld [vmem:[%s2728_s24 + $0x70] sm:$0xff] }
  0x2a   : > { %v435_v54 = vadd.f32 %v419_v46, %v402_v45  ;;  %v421_v56 = vmul.f32 %v2744_v5, %v2845_v50  ;;  %v2867_v60 = vld [vmem:[%s2734_s28 + $0x60] sm:$0xff]  ;;  %v405_v62 = vmul.f32 %v2736_v2, %v2858_v57  ;;  %v422_v63 = vmul.f32 %v2744_v5, %v2861_v58  ;;  %v2883_v10 = vld [vmem:[%s2734_s28 + $0x68] sm:$0xff]  ;;  %v2889_v14 = vld [vmem:[%s2734_s28 + $0x70] sm:$0xff] }
  0x2b   : > { %v436_v61 = vadd.f32 %v420_v53, %v403_v52  ;;  %v406_v1 = vmul.f32 %v2736_v2, %v2864_v59  ;;  %v423_v7 = vmul.f32 %v2744_v5, %v2867_v60  ;;  %v407_v19 = vmul.f32 %v2736_v2, %v2880_v8  ;;  %v2902_v27 = vld [vmem:[%s2728_s24 + $0x78] sm:$0xff]  ;;  %v663_v42 = vld [vmem:[%s3655_s4 + $0x8] sm:$0xff]  ;;  %v662_v43 = vld [vmem:[%s3655_s4] sm:$0xff] }
  0x2c   : > { %2423 = vmatmul.mubr.msk.f32.gmra.mxu0 %vm452_vm0, %v430_v31  ;;  %v437_v0 = vadd.f32 %v421_v56, %v404_v55  ;;  %v438_v15 = vadd.f32 %v422_v63, %v405_v62  ;;  %v424_v20 = vmul.f32 %v2744_v5, %v2883_v10  ;;  %v408_v23 = vmul.f32 %v2736_v2, %v2886_v13  ;;  %v2905_v28 = vld [vmem:[%s2734_s28 + $0x78] sm:$0xff]  ;;  %v2213_v45 = vld [vmem:[%s3654_s3 + $0x10] sm:$0xff]  ;;  %v2177_v46 = vld [vmem:[%s3656_s5] ss:$0 sm:$0xff] }
  0x2d   : > { %2425 = vmatprep.mubr.msk.f32.mxu0 %vm452_vm0, %v431_v34  ;;  %v439_v21 = vadd.f32 %v423_v7, %v406_v1  ;;  %v425_v26 = vmul.f32 %v2744_v5, %v2889_v14  ;;  %v409_v32 = vmul.f32 %v2736_v2, %v2902_v27  ;;  %v426_v33 = vmul.f32 %v2744_v5, %v2905_v28  ;;  %v665_v36 = vld [vmem:[%s3655_s4 + $0x18] sm:$0xff] }
  0x2e   : > { %v440_v31 = vadd.f32 %v424_v20, %v407_v19  ;;  %2443 = vmatprep.subr.mxu1 %v665_v36 }
  0x2f   : > { %v441_v34 = vadd.f32 %v425_v26, %v408_v23  ;;  %v442_v35 = vadd.f32 %v426_v33, %v409_v32  ;;  %2444 = vmatpush3.msra.mxu1 %v665_v36 }
  0x30   : > { %2426 = vmatmul.mubr.msk.f32.gmra.mxu0 %vm452_vm0, %v432_v41  ;;  %v664_v41 = vld [vmem:[%s3655_s4 + $0x10] sm:$0xff] }
  0x31   : > { %2428 = vmatprep.mubr.msk.f32.mxu0 %vm452_vm0, %v433_v44  ;;  %2445 = vmatprep.subr.mxu1 %v664_v41  ;;  %v2214_v44 = vld [vmem:[%s3654_s3 + $0x18] sm:$0xff] }
  0x32   : > { %2446 = vmatpush3.msra.mxu1 %v664_v41  ;;  %2475 = vmatprep.subr.mxu0 %v2214_v44 }
  0x33   : > { %2447 = vmatprep.subr.mxu1 %v663_v42  ;;  %2476 = vmatpush3.msra.mxu0 %v2214_v44 }
  0x34   : > { %2429 = vmatmul.mubr.msk.f32.gmra.mxu0 %vm452_vm0, %v434_v51  ;;  %2448 = vmatpush3.msra.mxu1 %v663_v42 }
  0x35   : > { %2431 = vmatprep.mubr.msk.f32.mxu0 %vm452_vm0, %v435_v54  ;;  %2449 = vmatprep.subr.mxu1 %v662_v43 }
  0x36   : > { %2450 = vmatpush3.msra.mxu1 %v662_v43  ;;  %2477 = vmatprep.subr.mxu0 %v2213_v45 }
  0x37   : > { %2478 = vmatpush3.msra.mxu0 %v2213_v45 }
  0x38   : > { %2432 = vmatmul.mubr.msk.f32.gmra.mxu0 %vm452_vm0, %v436_v61 }
  0x39   : > { %2434 = vmatprep.mubr.msk.f32.mxu0 %vm452_vm0, %v437_v0 }
  0x3c   : > { %2435 = vmatmul.mubr.msk.f32.gmra.mxu0 %vm452_vm0, %v438_v15 }
  0x3d   : > { %2437 = vmatprep.mubr.msk.f32.mxu0 %vm452_vm0, %v439_v21 }
  0x40   : > { %2438 = vmatmul.mubr.msk.f32.gmra.mxu0 %vm452_vm0, %v440_v31 }
  0x41   : > { %2440 = vmatprep.mubr.msk.f32.mxu0 %vm452_vm0, %v441_v34 }
  0x44   : > { %2441 = vmatmul.mubr.msk.f32.gmra.mxu0 %vm452_vm0, %v442_v35 }
  0xe8   : > { %v2421_v51 = vpop.f32.mrf.mxu0 }
  0xe9   : > { %v573_v52 = vadd.f32 %v2421_v51, %v2177_v46 }
  0xea   : > { %v567_v53 = vpop.f32.mrf.mxu0 }
  0xeb   : > { %v568_v54 = vadd.f32 %v2177_v46, %v567_v53  ;;  %v647_v61 = vand.u32 2147483647, %v573_v52 }
  0xec   : > { %v2424_v55 = vpop.f32.mrf.mxu0 }
  0xed   : > { %v646_v56 = vand.u32 2147483647, %v568_v54  ;;  %v583_v62 = vadd.f32 %v2424_v55, %v2177_v46 }
  0xee   : > { %v577_v63 = vpop.f32.mrf.mxu0 }
  0xef   : > { %v578_v0 = vadd.f32 %v2177_v46, %v577_v63  ;;  %2451 = vmatprep.mubr.msk.f32.mxu1 %vm673_vm1, %v646_v56  ;;  %v649_v15 = vand.u32 2147483647, %v583_v62 }
  0xf0   : > { %v2427_v1 = vpop.f32.mrf.mxu0  ;;  %2452 = vmatmul.mubr.msk.f32.vlgmr.msra.gmra.mxu1 %vm673_vm1, %v647_v61 }
  0xf1   : > { %v648_v7 = vand.u32 2147483647, %v578_v0  ;;  %v593_v19 = vadd.f32 %v2427_v1, %v2177_v46 }
  0xf2   : > { %v587_v20 = vpop.f32.mrf.mxu0 }
  0xf3   : > { %v588_v21 = vadd.f32 %v2177_v46, %v587_v20  ;;  %2454 = vmatprep.mubr.msk.f32.mxu1 %vm673_vm1, %v648_v7  ;;  %v651_v31 = vand.u32 2147483647, %v593_v19 }
  0xf4   : > { %v2430_v23 = vpop.f32.mrf.mxu0  ;;  %2455 = vmatmul.mubr.msk.f32.gmra.mxu1 %vm673_vm1, %v649_v15 }
  0xf5   : > { %v650_v26 = vand.u32 2147483647, %v588_v21  ;;  %v603_v32 = vadd.f32 %v2430_v23, %v2177_v46 }
  0xf6   : > { %v597_v33 = vpop.f32.mrf.mxu0 }
  0xf7   : > { %v598_v34 = vadd.f32 %v2177_v46, %v597_v33  ;;  %2457 = vmatprep.mubr.msk.f32.mxu1 %vm673_vm1, %v650_v26  ;;  %v653_v41 = vand.u32 2147483647, %v603_v32  ;;  %v2236_v32 = vld [vmem:[%s3655_s4 + $0x38] sm:$0xff]  ;;  %v2235_v33 = vld [vmem:[%s3655_s4 + $0x30] sm:$0xff] }
  0xf8   : > { %v2433_v35 = vpop.f32.mrf.mxu0  ;;  %2458 = vmatmul.mubr.msk.f32.gmra.mxu1 %vm673_vm1, %v651_v31  ;;  %2503 = vmatprep.subr.mxu1 %v2236_v32 }
  0xf9   : > { %v652_v36 = vand.u32 2147483647, %v598_v34  ;;  %v613_v42 = vadd.f32 %v2433_v35, %v2177_v46  ;;  %2504 = vmatpush3.msra.mxu1 %v2236_v32  ;;  %v2233_v34 = vld [vmem:[%s3655_s4 + $0x20] sm:$0xff] }
  0xfa   : > { %v607_v43 = vpop.f32.mrf.mxu0  ;;  %2505 = vmatprep.subr.mxu1 %v2235_v33  ;;  %v2968_v35 = vld [vmem:[%s3657_s6] ss:$0 sm:$0xff] }
  0xfb   : > { %v608_v44 = vadd.f32 %v2177_v46, %v607_v43  ;;  %2460 = vmatprep.mubr.msk.f32.mxu1 %vm673_vm1, %v652_v36  ;;  %v655_v52 = vand.u32 2147483647, %v613_v42  ;;  %2506 = vmatpush3.msra.mxu1 %v2235_v33 }
  0xfc   : > { %v2436_v45 = vpop.f32.mrf.mxu0  ;;  %2461 = vmatmul.mubr.msk.f32.gmra.mxu1 %vm673_vm1, %v653_v41 }
  0xfd   : > { %v654_v51 = vand.u32 2147483647, %v608_v44  ;;  %v623_v53 = vadd.f32 %v2436_v45, %v2177_v46 }
  0xfe   : > { %v617_v54 = vpop.f32.mrf.mxu0 }
  0xff   : > { %v618_v55 = vadd.f32 %v2177_v46, %v617_v54  ;;  %2463 = vmatprep.mubr.msk.f32.mxu1 %vm673_vm1, %v654_v51  ;;  %v657_v62 = vand.u32 2147483647, %v623_v53  ;;  %v2974_v51 = vstv %s2211_s9 }
 0x100   : > { %v2439_v56 = vpop.f32.mrf.mxu0  ;;  %2464 = vmatmul.mubr.msk.f32.gmra.mxu1 %vm673_vm1, %v655_v52  ;;  %v2976_v52 = vstv %s2212_s10 }
 0x101   : > { %v656_v61 = vand.u32 2147483647, %v618_v55  ;;  %v633_v63 = vadd.f32 %v2439_v56, %v2177_v46 }
 0x102   : > { %v627_v0 = vpop.f32.mrf.mxu0 }
 0x103   : > { %v628_v1 = vadd.f32 %v2177_v46, %v627_v0  ;;  %2466 = vmatprep.mubr.msk.f32.mxu1 %vm673_vm1, %v656_v61  ;;  %v659_v19 = vand.u32 2147483647, %v633_v63 }
 0x104   : > { %v2442_v7 = vpop.f32.mrf.mxu0  ;;  %2467 = vmatmul.mubr.msk.f32.gmra.mxu1 %vm673_vm1, %v657_v62 }
 0x105   : > { %v658_v15 = vand.u32 2147483647, %v628_v1  ;;  %v643_v20 = vadd.f32 %v2442_v7, %v2177_v46 }
 0x106   : > { %v637_v21 = vpop.f32.mrf.mxu0 }
 0x107   : > { %v638_v23 = vadd.f32 %v2177_v46, %v637_v21  ;;  %2469 = vmatprep.mubr.msk.f32.mxu1 %vm673_vm1, %v658_v15  ;;  %v661_v31 = vand.u32 2147483647, %v643_v20  ;;  %v2234_v46 = vld [vmem:[%s3655_s4 + $0x28] sm:$0xff] }
 0x108   : > { %2470 = vmatmul.mubr.msk.f32.gmra.mxu1 %vm673_vm1, %v659_v19  ;;  %2507 = vmatprep.subr.mxu1 %v2234_v46 }
 0x109   : > { %v660_v26 = vand.u32 2147483647, %v638_v23  ;;  %2508 = vmatpush3.msra.mxu1 %v2234_v46 }
 0x10a   : > { %2509 = vmatprep.subr.mxu1 %v2233_v34 }
 0x10b   : > { %2472 = vmatprep.mubr.msk.f32.mxu1 %vm673_vm1, %v660_v26  ;;  %2510 = vmatpush3.msra.mxu1 %v2233_v34 }
 0x10c   : > { %2473 = vmatmul.mubr.msk.f32.gmra.mxu1 %vm673_vm1, %v661_v31 }
 0x1b0   : > { %v2453_v36 = vpop.f32.mrf.mxu1 }
 0x1b1   : > { %v794_v41 = vadd.f32 %v2453_v36, %v2968_v35 }
 0x1b2   : > { %v788_v42 = vpop.f32.mrf.mxu1 }
 0x1b3   : > { %v868_v43 = vmul.f32 %v794_v41, %v2744_v5  ;;  %v900_v44 = vmul.f32 %v794_v41, %v2736_v2  ;;  %v789_v45 = vadd.f32 %v2968_v35, %v788_v42 }
 0x1b4   : > { %v2456_v53 = vpop.f32.mrf.mxu1 }
 0x1b5   : > { %v2979_v54 = vadd.f32 %v868_v43, %v2747_v6  ;;  %v2982_v55 = vsub.f32 %v2754_v9, %v900_v44  ;;  %v867_v56 = vmul.f32 %v789_v45, %v2744_v5  ;;  %v899_v61 = vmul.f32 %v789_v45, %v2736_v2 }
 0x1b6   : > { %v804_v62 = vadd.f32 %v2456_v53, %v2968_v35  ;;  %v798_v63 = vpop.f32.mrf.mxu1 }
 0x1b7   : > { %v935_v0 = vmul.f32 %v2974_v51, %v2979_v54  ;;  %v952_v1 = vmul.f32 %v2976_v52, %v2982_v55  ;;  %v2992_v7 = vadd.f32 %v867_v56, %v2739_v3  ;;  %v2995_v6 = vsub.f32 %v2742_v4, %v899_v61 }
 0x1b8   : > { %v870_v9 = vmul.f32 %v804_v62, %v2744_v5  ;;  %v902_v15 = vmul.f32 %v804_v62, %v2736_v2  ;;  %v799_v19 = vadd.f32 %v2968_v35, %v798_v63  ;;  %v2459_v20 = vpop.f32.mrf.mxu1 }
 0x1b9   : > { %v968_v21 = vadd.f32 %v952_v1, %v935_v0  ;;  %v934_v23 = vmul.f32 %v2974_v51, %v2992_v7  ;;  %v951_v26 = vmul.f32 %v2976_v52, %v2995_v6  ;;  %v814_v3 = vadd.f32 %v2459_v20, %v2968_v35 }
 0x1ba   : > { %v3006_v31 = vadd.f32 %v870_v9, %v2771_v16  ;;  %v3009_v4 = vsub.f32 %v2774_v17, %v902_v15  ;;  %v869_v32 = vmul.f32 %v799_v19, %v2744_v5  ;;  %v901_v33 = vmul.f32 %v799_v19, %v2736_v2  ;;  %v808_v46 = vpop.f32.mrf.mxu1 }
 0x1bb   : > { %v872_v34 = vmul.f32 %v814_v3, %v2744_v5  ;;  %v904_v36 = vmul.f32 %v814_v3, %v2736_v2  ;;  %v809_v41 = vadd.f32 %v2968_v35, %v808_v46  ;;  %v967_v42 = vadd.f32 %v951_v26, %v934_v23 }
 0x1bc   : > { %v937_v43 = vmul.f32 %v2974_v51, %v3006_v31  ;;  %v954_v16 = vmul.f32 %v2976_v52, %v3009_v4  ;;  %v3021_v17 = vadd.f32 %v869_v32, %v2759_v11  ;;  %v3024_v44 = vsub.f32 %v2762_v12, %v901_v33  ;;  %v2462_v45 = vpop.f32.mrf.mxu1 }
 0x1bd   : > { %v3027_v53 = vadd.f32 %v872_v34, %v2789_v24  ;;  %v3030_v56 = vsub.f32 %v2792_v25, %v904_v36  ;;  %v871_v61 = vmul.f32 %v809_v41, %v2744_v5  ;;  %v903_v62 = vmul.f32 %v809_v41, %v2736_v2  ;;  %2479 = vmatprep.mubr.msk.f32.mxu0 %vm452_vm0, %v967_v42 }
 0x1be   : > { %v936_v11 = vmul.f32 %v2974_v51, %v3021_v17  ;;  %v953_v12 = vmul.f32 %v2976_v52, %v3024_v44  ;;  %v824_v63 = vadd.f32 %v2462_v45, %v2968_v35  ;;  %v818_v0 = vpop.f32.mrf.mxu1  ;;  %2480 = vmatmul.mubr.msk.f32.vlgmr.msra.gmra.mxu0 %vm452_vm0, %v968_v21  ;;  %v970_v24 = vadd.f32 %v954_v16, %v937_v43 }
 0x1bf   : > { %v939_v25 = vmul.f32 %v2974_v51, %v3027_v53  ;;  %v956_v1 = vmul.f32 %v2976_v52, %v3030_v56  ;;  %v3046_v9 = vadd.f32 %v871_v61, %v2777_v18  ;;  %v3049_v15 = vsub.f32 %v2784_v22, %v903_v62 }
 0x1c0   : > { %v874_v19 = vmul.f32 %v824_v63, %v2744_v5  ;;  %v906_v20 = vmul.f32 %v824_v63, %v2736_v2  ;;  %v819_v23 = vadd.f32 %v2968_v35, %v818_v0  ;;  %v2465_v21 = vpop.f32.mrf.mxu1  ;;  %v969_v26 = vadd.f32 %v953_v12, %v936_v11 }
 0x1c1   : > { %v938_v3 = vmul.f32 %v2974_v51, %v3046_v9  ;;  %v955_v32 = vmul.f32 %v2976_v52, %v3049_v15  ;;  %v834_v18 = vadd.f32 %v2465_v21, %v2968_v35  ;;  %v972_v33 = vadd.f32 %v956_v1, %v939_v25 }
 0x1c2   : > { %v3060_v22 = vadd.f32 %v874_v19, %v2814_v37  ;;  %v3063_v46 = vsub.f32 %v2817_v38, %v906_v20  ;;  %v873_v34 = vmul.f32 %v819_v23, %v2744_v5  ;;  %v905_v36 = vmul.f32 %v819_v23, %v2736_v2  ;;  %2482 = vmatprep.mubr.msk.f32.mxu0 %vm452_vm0, %v969_v26  ;;  %v828_v41 = vpop.f32.mrf.mxu1 }
 0x1c3   : > { %v876_v42 = vmul.f32 %v834_v18, %v2744_v5  ;;  %v908_v43 = vmul.f32 %v834_v18, %v2736_v2  ;;  %v829_v16 = vadd.f32 %v2968_v35, %v828_v41  ;;  %2483 = vmatmul.mubr.msk.f32.gmra.mxu0 %vm452_vm0, %v970_v24  ;;  %v971_v37 = vadd.f32 %v955_v32, %v938_v3 }
 0x1c4   : > { %v941_v38 = vmul.f32 %v2974_v51, %v3060_v22  ;;  %v958_v45 = vmul.f32 %v2976_v52, %v3063_v46  ;;  %v3077_v61 = vadd.f32 %v873_v34, %v2797_v29  ;;  %v3080_v62 = vsub.f32 %v2800_v30, %v905_v36  ;;  %v2468_v11 = vpop.f32.mrf.mxu1 }
 0x1c5   : > { %v3083_v12 = vadd.f32 %v876_v42, %v2836_v47  ;;  %v3086_v63 = vsub.f32 %v2839_v48, %v908_v43  ;;  %v875_v0 = vmul.f32 %v829_v16, %v2744_v5  ;;  %v907_v24 = vmul.f32 %v829_v16, %v2736_v2  ;;  %2485 = vmatprep.mubr.msk.f32.mxu0 %vm452_vm0, %v971_v37 }
 0x1c6   : > { %v940_v29 = vmul.f32 %v2974_v51, %v3077_v61  ;;  %v957_v30 = vmul.f32 %v2976_v52, %v3080_v62  ;;  %v844_v25 = vadd.f32 %v2468_v11, %v2968_v35  ;;  %v838_v1 = vpop.f32.mrf.mxu1  ;;  %v974_v47 = vadd.f32 %v958_v45, %v941_v38 }
 0x1c7   : > { %v943_v48 = vmul.f32 %v2974_v51, %v3083_v12  ;;  %v960_v19 = vmul.f32 %v2976_v52, %v3086_v63  ;;  %v3101_v20 = vadd.f32 %v875_v0, %v2820_v39  ;;  %v3104_v23 = vsub.f32 %v2823_v40, %v907_v24  ;;  %2486 = vmatmul.mubr.msk.f32.gmra.mxu0 %vm452_vm0, %v972_v33 }
 0x1c8   : > { %v878_v21 = vmul.f32 %v844_v25, %v2744_v5  ;;  %v910_v26 = vmul.f32 %v844_v25, %v2736_v2  ;;  %v839_v3 = vadd.f32 %v2968_v35, %v838_v1  ;;  %v2471_v32 = vpop.f32.mrf.mxu1  ;;  %v973_v18 = vadd.f32 %v957_v30, %v940_v29 }
 0x1c9   : > { %v942_v34 = vmul.f32 %v2974_v51, %v3101_v20  ;;  %v959_v39 = vmul.f32 %v2976_v52, %v3104_v23  ;;  %v854_v36 = vadd.f32 %v2471_v32, %v2968_v35  ;;  %v976_v40 = vadd.f32 %v960_v19, %v943_v48 }
 0x1ca   : > { %v3116_v41 = vadd.f32 %v878_v21, %v2858_v57  ;;  %v3119_v33 = vsub.f32 %v2861_v58, %v910_v26  ;;  %v877_v42 = vmul.f32 %v839_v3, %v2744_v5  ;;  %v909_v43 = vmul.f32 %v839_v3, %v2736_v2  ;;  %2488 = vmatprep.mubr.msk.f32.mxu0 %vm452_vm0, %v973_v18  ;;  %v848_v16 = vpop.f32.mrf.mxu1 }
 0x1cb   : > { %v880_v37 = vmul.f32 %v854_v36, %v2744_v5  ;;  %v912_v38 = vmul.f32 %v854_v36, %v2736_v2  ;;  %v849_v45 = vadd.f32 %v2968_v35, %v848_v16  ;;  %2489 = vmatmul.mubr.msk.f32.gmra.mxu0 %vm452_vm0, %v974_v47  ;;  %v975_v57 = vadd.f32 %v959_v39, %v942_v34 }
 0x1cc   : > { %v945_v58 = vmul.f32 %v2974_v51, %v3116_v41  ;;  %v962_v11 = vmul.f32 %v2976_v52, %v3119_v33  ;;  %v3133_v0 = vadd.f32 %v877_v42, %v2842_v49  ;;  %v3136_v24 = vsub.f32 %v2845_v50, %v909_v43  ;;  %v2474_v29 = vpop.f32.mrf.mxu1 }
 0x1cd   : > { %v3139_v30 = vadd.f32 %v880_v37, %v2880_v8  ;;  %v3142_v25 = vsub.f32 %v2883_v10, %v912_v38  ;;  %v879_v1 = vmul.f32 %v849_v45, %v2744_v5  ;;  %v911_v47 = vmul.f32 %v849_v45, %v2736_v2  ;;  %2491 = vmatprep.mubr.msk.f32.mxu0 %vm452_vm0, %v975_v57  ;;  %v2258_v45 = vld [vmem:[%s3654_s3 + $0x28] sm:$0xff]  ;;  %v2257_v57 = vld [vmem:[%s3654_s3 + $0x20] sm:$0xff] }
 0x1ce   : > { %v944_v49 = vmul.f32 %v2974_v51, %v3133_v0  ;;  %v961_v50 = vmul.f32 %v2976_v52, %v3136_v24  ;;  %v864_v48 = vadd.f32 %v2474_v29, %v2968_v35  ;;  %v858_v19 = vpop.f32.mrf.mxu1  ;;  %v978_v21 = vadd.f32 %v962_v11, %v945_v58  ;;  %2535 = vmatprep.subr.mxu0 %v2258_v45  ;;  %v2216_v58 = vld [vmem:[%s3656_s5 + $0x1] ss:$0 sm:$0xff] }
 0x1cf   : > { %v3153_v8 = vadd.f32 %v879_v1, %v2864_v59  ;;  %v3156_v10 = vsub.f32 %v2867_v60, %v911_v47  ;;  %2492 = vmatmul.mubr.msk.f32.gmra.mxu0 %vm452_vm0, %v976_v40  ;;  %v859_v32 = vadd.f32 %v2968_v35, %v858_v19  ;;  %v947_v34 = vmul.f32 %v2974_v51, %v3139_v30 }
 0x1d0   : > { %v882_v26 = vmul.f32 %v864_v48, %v2744_v5  ;;  %v914_v3 = vmul.f32 %v864_v48, %v2736_v2  ;;  %v977_v18 = vadd.f32 %v961_v50, %v944_v49  ;;  %v964_v59 = vmul.f32 %v2976_v52, %v3142_v25  ;;  %2536 = vmatpush3.msra.mxu0 %v2258_v45 }
 0x1d1   : > { %v946_v60 = vmul.f32 %v2974_v51, %v3153_v8  ;;  %v963_v39 = vmul.f32 %v2976_v52, %v3156_v10  ;;  %v881_v35 = vmul.f32 %v859_v32, %v2744_v5  ;;  %v913_v42 = vmul.f32 %v859_v32, %v2736_v2  ;;  %2537 = vmatprep.subr.mxu0 %v2257_v57 }
 0x1d2   : > { %v3171_v36 = vadd.f32 %v882_v26, %v2902_v27  ;;  %v3174_v40 = vsub.f32 %v2905_v28, %v914_v3  ;;  %2494 = vmatprep.mubr.msk.f32.mxu0 %vm452_vm0, %v977_v18  ;;  %v980_v2 = vadd.f32 %v964_v59, %v947_v34  ;;  %2538 = vmatpush3.msra.mxu0 %v2257_v57 }
 0x1d3   : > { %2495 = vmatmul.mubr.msk.f32.gmra.mxu0 %vm452_vm0, %v978_v21  ;;  %v979_v43 = vadd.f32 %v963_v39, %v946_v60  ;;  %v3181_v16 = vadd.f32 %v881_v35, %v2886_v13  ;;  %v3184_v37 = vsub.f32 %v2889_v14, %v913_v42 }
 0x1d4   : > { %v949_v27 = vmul.f32 %v2974_v51, %v3171_v36  ;;  %v966_v28 = vmul.f32 %v2976_v52, %v3174_v40 }
 0x1d5   : > { %2497 = vmatprep.mubr.msk.f32.mxu0 %vm452_vm0, %v979_v43  ;;  %v948_v5 = vmul.f32 %v2974_v51, %v3181_v16  ;;  %v965_v38 = vmul.f32 %v2976_v52, %v3184_v37 }
 0x1d6   : > { %v982_v14 = vadd.f32 %v966_v28, %v949_v27 }
 0x1d7   : > { %2498 = vmatmul.mubr.msk.f32.gmra.mxu0 %vm452_vm0, %v980_v2  ;;  %v981_v13 = vadd.f32 %v965_v38, %v948_v5 }
 0x1d9   : > { %2500 = vmatprep.mubr.msk.f32.mxu0 %vm452_vm0, %v981_v13 }
 0x1db   : > { %2501 = vmatmul.mubr.msk.f32.gmra.mxu0 %vm452_vm0, %v982_v14 }
 0x27e   : > { %v2481_v11 = vpop.f32.mrf.mxu0 }
 0x27f   : > { %v1114_v29 = vadd.f32 %v2481_v11, %v2216_v58 }
 0x280   : > { %v1108_v1 = vpop.f32.mrf.mxu0 }
 0x281   : > { %v1109_v47 = vadd.f32 %v2216_v58, %v1108_v1  ;;  %v1188_v48 = vand.u32 2147483647, %v1114_v29 }
 0x283   : > { %v1187_v49 = vand.u32 2147483647, %v1109_v47  ;;  %v2484_v50 = vpop.f32.mrf.mxu0 }
 0x284   : > { %v1124_v19 = vadd.f32 %v2484_v50, %v2216_v58 }
 0x285   : > { %v1118_v21 = vpop.f32.mrf.mxu0  ;;  %2511 = vmatprep.mubr.msk.f32.mxu1 %vm673_vm1, %v1187_v49 }
 0x286   : > { %v1119_v26 = vadd.f32 %v2216_v58, %v1118_v21  ;;  %2512 = vmatmul.mubr.msk.f32.vlgmr.msra.gmra.mxu1 %vm673_vm1, %v1188_v48  ;;  %v1190_v18 = vand.u32 2147483647, %v1124_v19 }
 0x287   : > { %v2487_v3 = vpop.f32.mrf.mxu0 }
 0x288   : > { %v1189_v32 = vand.u32 2147483647, %v1119_v26  ;;  %v1134_v34 = vadd.f32 %v2487_v3, %v2216_v58 }
 0x289   : > { %v1128_v59 = vpop.f32.mrf.mxu0 }
 0x28a   : > { %v1129_v60 = vadd.f32 %v2216_v58, %v1128_v59  ;;  %2514 = vmatprep.mubr.msk.f32.mxu1 %vm673_vm1, %v1189_v32  ;;  %v1192_v42 = vand.u32 2147483647, %v1134_v34 }
 0x28b   : > { %v2490_v39 = vpop.f32.mrf.mxu0  ;;  %2515 = vmatmul.mubr.msk.f32.gmra.mxu1 %vm673_vm1, %v1190_v18 }
 0x28c   : > { %v1191_v35 = vand.u32 2147483647, %v1129_v60  ;;  %v1144_v43 = vadd.f32 %v2490_v39, %v2216_v58 }
 0x28d   : > { %v1138_v27 = vpop.f32.mrf.mxu0 }
 0x28e   : > { %v1139_v28 = vadd.f32 %v2216_v58, %v1138_v27  ;;  %2517 = vmatprep.mubr.msk.f32.mxu1 %vm673_vm1, %v1191_v35  ;;  %v1194_v38 = vand.u32 2147483647, %v1144_v43  ;;  %v2280_v43 = vld [vmem:[%s3655_s4 + $0x58] sm:$0xff]  ;;  %v2279_v27 = vld [vmem:[%s3655_s4 + $0x50] sm:$0xff] }
 0x28f   : > { %v2493_v2 = vpop.f32.mrf.mxu0  ;;  %2518 = vmatmul.mubr.msk.f32.gmra.mxu1 %vm673_vm1, %v1192_v42  ;;  %2563 = vmatprep.subr.mxu1 %v2280_v43 }
 0x290   : > { %v1193_v5 = vand.u32 2147483647, %v1139_v28  ;;  %v1154_v13 = vadd.f32 %v2493_v2, %v2216_v58  ;;  %2564 = vmatpush3.msra.mxu1 %v2280_v43  ;;  %v2277_v28 = vld [vmem:[%s3655_s4 + $0x40] sm:$0xff] }
 0x291   : > { %v1148_v14 = vpop.f32.mrf.mxu0  ;;  %2565 = vmatprep.subr.mxu1 %v2279_v27  ;;  %v3238_v2 = vld [vmem:[%s3657_s6 + $0x1] ss:$0 sm:$0xff] }
 0x292   : > { %v1149_v45 = vadd.f32 %v2216_v58, %v1148_v14  ;;  %2520 = vmatprep.mubr.msk.f32.mxu1 %vm673_vm1, %v1193_v5  ;;  %v1196_v29 = vand.u32 2147483647, %v1154_v13  ;;  %2566 = vmatpush3.msra.mxu1 %v2279_v27 }
 0x293   : > { %v2496_v57 = vpop.f32.mrf.mxu0  ;;  %2521 = vmatmul.mubr.msk.f32.gmra.mxu1 %vm673_vm1, %v1194_v38 }
 0x294   : > { %v1195_v11 = vand.u32 2147483647, %v1149_v45  ;;  %v1164_v1 = vadd.f32 %v2496_v57, %v2216_v58 }
 0x295   : > { %v1158_v47 = vpop.f32.mrf.mxu0 }
 0x296   : > { %v1159_v49 = vadd.f32 %v2216_v58, %v1158_v47  ;;  %2523 = vmatprep.mubr.msk.f32.mxu1 %vm673_vm1, %v1195_v11  ;;  %v1198_v19 = vand.u32 2147483647, %v1164_v1  ;;  %v3244_v11 = vstv %s2255_s29 }
 0x297   : > { %v2499_v50 = vpop.f32.mrf.mxu0  ;;  %2524 = vmatmul.mubr.msk.f32.gmra.mxu1 %vm673_vm1, %v1196_v29  ;;  %v3246_v29 = vstv %s2256_s30 }
 0x298   : > { %v1197_v48 = vand.u32 2147483647, %v1159_v49  ;;  %v1174_v21 = vadd.f32 %v2499_v50, %v2216_v58 }
 0x299   : > { %v1168_v26 = vpop.f32.mrf.mxu0 }
 0x29a   : > { %v1169_v3 = vadd.f32 %v2216_v58, %v1168_v26  ;;  %2526 = vmatprep.mubr.msk.f32.mxu1 %vm673_vm1, %v1197_v48  ;;  %v1200_v34 = vand.u32 2147483647, %v1174_v21 }
 0x29b   : > { %v2502_v32 = vpop.f32.mrf.mxu0  ;;  %2527 = vmatmul.mubr.msk.f32.gmra.mxu1 %vm673_vm1, %v1198_v19 }
 0x29c   : > { %v1199_v18 = vand.u32 2147483647, %v1169_v3  ;;  %v1184_v59 = vadd.f32 %v2502_v32, %v2216_v58 }
 0x29d   : > { %v1178_v60 = vpop.f32.mrf.mxu0 }
 0x29e   : > { %v1179_v39 = vadd.f32 %v2216_v58, %v1178_v60  ;;  %2529 = vmatprep.mubr.msk.f32.mxu1 %vm673_vm1, %v1199_v18  ;;  %v1202_v42 = vand.u32 2147483647, %v1184_v59  ;;  %v2278_v58 = vld [vmem:[%s3655_s4 + $0x48] sm:$0xff] }
 0x29f   : > { %2530 = vmatmul.mubr.msk.f32.gmra.mxu1 %vm673_vm1, %v1200_v34  ;;  %2567 = vmatprep.subr.mxu1 %v2278_v58 }
 0x2a0   : > { %v1201_v35 = vand.u32 2147483647, %v1179_v39  ;;  %2568 = vmatpush3.msra.mxu1 %v2278_v58 }
 0x2a1   : > { %2569 = vmatprep.subr.mxu1 %v2277_v28 }
 0x2a2   : > { %2532 = vmatprep.mubr.msk.f32.mxu1 %vm673_vm1, %v1201_v35  ;;  %2570 = vmatpush3.msra.mxu1 %v2277_v28 }
 0x2a3   : > { %2533 = vmatmul.mubr.msk.f32.gmra.mxu1 %vm673_vm1, %v1202_v42 }
 0x346   : > { %v2513_v5 = vpop.f32.mrf.mxu1 }
 0x347   : > { %v1336_v38 = vadd.f32 %v2513_v5, %v3238_v2 }
 0x348   : > { %v1330_v13 = vpop.f32.mrf.mxu1 }
 0x349   : > { %v1410_v14 = vmul.f32 %v1336_v38, %v2976_v52  ;;  %v1442_v45 = vmul.f32 %v1336_v38, %v2974_v51  ;;  %v1331_v57 = vadd.f32 %v3238_v2, %v1330_v13 }
 0x34b   : > { %v3249_v1 = vadd.f32 %v1410_v14, %v2979_v54  ;;  %v3252_v47 = vsub.f32 %v2982_v55, %v1442_v45  ;;  %v1409_v49 = vmul.f32 %v1331_v57, %v2976_v52  ;;  %v1441_v50 = vmul.f32 %v1331_v57, %v2974_v51  ;;  %v2516_v48 = vpop.f32.mrf.mxu1 }
 0x34c   : > { %v1346_v19 = vadd.f32 %v2516_v48, %v3238_v2 }
 0x34d   : > { %v1477_v21 = vmul.f32 %v3244_v11, %v3249_v1  ;;  %v1494_v26 = vmul.f32 %v3246_v29, %v3252_v47  ;;  %v3262_v3 = vadd.f32 %v1409_v49, %v2992_v7  ;;  %v3265_v54 = vsub.f32 %v2995_v6, %v1441_v50  ;;  %v1340_v55 = vpop.f32.mrf.mxu1 }
 0x34e   : > { %v1412_v32 = vmul.f32 %v1346_v19, %v2976_v52  ;;  %v1444_v18 = vmul.f32 %v1346_v19, %v2974_v51  ;;  %v1341_v34 = vadd.f32 %v3238_v2, %v1340_v55 }
 0x34f   : > { %v1476_v59 = vmul.f32 %v3244_v11, %v3262_v3  ;;  %v1493_v60 = vmul.f32 %v3246_v29, %v3265_v54  ;;  %v2519_v39 = vpop.f32.mrf.mxu1  ;;  %v1510_v43 = vadd.f32 %v1494_v26, %v1477_v21 }
 0x350   : > { %v3275_v7 = vadd.f32 %v1412_v32, %v3006_v31  ;;  %v3278_v6 = vsub.f32 %v3009_v4, %v1444_v18  ;;  %v1411_v35 = vmul.f32 %v1341_v34, %v2976_v52  ;;  %v1443_v42 = vmul.f32 %v1341_v34, %v2974_v51 }
 0x351   : > { %v1356_v27 = vadd.f32 %v2519_v39, %v3238_v2  ;;  %v1350_v58 = vpop.f32.mrf.mxu1  ;;  %v1509_v28 = vadd.f32 %v1493_v60, %v1476_v59 }
 0x352   : > { %v1479_v5 = vmul.f32 %v3244_v11, %v3275_v7  ;;  %v1496_v38 = vmul.f32 %v3246_v29, %v3278_v6  ;;  %v3288_v31 = vadd.f32 %v1411_v35, %v3021_v17  ;;  %v3291_v4 = vsub.f32 %v3024_v44, %v1443_v42 }
 0x353   : > { %v1414_v13 = vmul.f32 %v1356_v27, %v2976_v52  ;;  %v1446_v14 = vmul.f32 %v1356_v27, %v2974_v51  ;;  %v1351_v45 = vadd.f32 %v3238_v2, %v1350_v58  ;;  %v2522_v57 = vpop.f32.mrf.mxu1  ;;  %2539 = vmatprep.mubr.msk.f32.mxu0 %vm452_vm0, %v1509_v28 }
 0x354   : > { %v1478_v49 = vmul.f32 %v3244_v11, %v3288_v31  ;;  %v1495_v50 = vmul.f32 %v3246_v29, %v3291_v4  ;;  %v1366_v17 = vadd.f32 %v2522_v57, %v3238_v2  ;;  %2540 = vmatmul.mubr.msk.f32.vlgmr.msra.gmra.mxu0 %vm452_vm0, %v1510_v43  ;;  %v1512_v44 = vadd.f32 %v1496_v38, %v1479_v5 }
 0x355   : > { %v3304_v48 = vadd.f32 %v1414_v13, %v3027_v53  ;;  %v3307_v19 = vsub.f32 %v3030_v56, %v1446_v14  ;;  %v1413_v21 = vmul.f32 %v1351_v45, %v2976_v52  ;;  %v1445_v26 = vmul.f32 %v1351_v45, %v2974_v51  ;;  %v1360_v55 = vpop.f32.mrf.mxu1 }
 0x356   : > { %v1416_v32 = vmul.f32 %v1366_v17, %v2976_v52  ;;  %v1448_v18 = vmul.f32 %v1366_v17, %v2974_v51  ;;  %v1361_v34 = vadd.f32 %v3238_v2, %v1360_v55  ;;  %v1511_v59 = vadd.f32 %v1495_v50, %v1478_v49 }
 0x357   : > { %v1481_v60 = vmul.f32 %v3244_v11, %v3304_v48  ;;  %v1498_v53 = vmul.f32 %v3246_v29, %v3307_v19  ;;  %v3319_v56 = vadd.f32 %v1413_v21, %v3046_v9  ;;  %v3322_v39 = vsub.f32 %v3049_v15, %v1445_v26  ;;  %v2525_v35 = vpop.f32.mrf.mxu1 }
 0x358   : > { %v3325_v42 = vadd.f32 %v1416_v32, %v3060_v22  ;;  %v3328_v43 = vsub.f32 %v3063_v46, %v1448_v18  ;;  %v1415_v27 = vmul.f32 %v1361_v34, %v2976_v52  ;;  %v1447_v58 = vmul.f32 %v1361_v34, %v2974_v51  ;;  %2542 = vmatprep.mubr.msk.f32.mxu0 %vm452_vm0, %v1511_v59 }
 0x359   : > { %v1480_v9 = vmul.f32 %v3244_v11, %v3319_v56  ;;  %v1497_v15 = vmul.f32 %v3246_v29, %v3322_v39  ;;  %v1376_v28 = vadd.f32 %v2525_v35, %v3238_v2  ;;  %v1370_v5 = vpop.f32.mrf.mxu1  ;;  %2543 = vmatmul.mubr.msk.f32.gmra.mxu0 %vm452_vm0, %v1512_v44  ;;  %v1514_v22 = vadd.f32 %v1498_v53, %v1481_v60 }
 0x35a   : > { %v1483_v46 = vmul.f32 %v3244_v11, %v3325_v42  ;;  %v1500_v38 = vmul.f32 %v3246_v29, %v3328_v43  ;;  %v3344_v13 = vadd.f32 %v1415_v27, %v3077_v61  ;;  %v3347_v14 = vsub.f32 %v3080_v62, %v1447_v58 }
 0x35b   : > { %v1418_v45 = vmul.f32 %v1376_v28, %v2976_v52  ;;  %v1450_v57 = vmul.f32 %v1376_v28, %v2974_v51  ;;  %v1371_v49 = vadd.f32 %v3238_v2, %v1370_v5  ;;  %v2528_v50 = vpop.f32.mrf.mxu1  ;;  %v1513_v17 = vadd.f32 %v1497_v15, %v1480_v9 }
 0x35c   : > { %v1482_v44 = vmul.f32 %v3244_v11, %v3344_v13  ;;  %v1499_v21 = vmul.f32 %v3246_v29, %v3347_v14  ;;  %v1386_v61 = vadd.f32 %v2528_v50, %v3238_v2  ;;  %v1516_v26 = vadd.f32 %v1500_v38, %v1483_v46 }
 0x35d   : > { %v3358_v62 = vadd.f32 %v1418_v45, %v3083_v12  ;;  %v3361_v55 = vsub.f32 %v3086_v63, %v1450_v57  ;;  %v1417_v32 = vmul.f32 %v1371_v49, %v2976_v52  ;;  %v1449_v18 = vmul.f32 %v1371_v49, %v2974_v51  ;;  %2545 = vmatprep.mubr.msk.f32.mxu0 %vm452_vm0, %v1513_v17  ;;  %v1380_v34 = vpop.f32.mrf.mxu1 }
 0x35e   : > { %v1420_v59 = vmul.f32 %v1386_v61, %v2976_v52  ;;  %v1452_v60 = vmul.f32 %v1386_v61, %v2974_v51  ;;  %v1381_v53 = vadd.f32 %v3238_v2, %v1380_v34  ;;  %2546 = vmatmul.mubr.msk.f32.gmra.mxu0 %vm452_vm0, %v1514_v22  ;;  %v1515_v12 = vadd.f32 %v1499_v21, %v1482_v44 }
 0x35f   : > { %v1485_v63 = vmul.f32 %v3244_v11, %v3358_v62  ;;  %v1502_v35 = vmul.f32 %v3246_v29, %v3361_v55  ;;  %v3375_v27 = vadd.f32 %v1417_v32, %v3101_v20  ;;  %v3378_v58 = vsub.f32 %v3104_v23, %v1449_v18  ;;  %v2531_v9 = vpop.f32.mrf.mxu1 }
 0x360   : > { %v3381_v15 = vadd.f32 %v1420_v59, %v3116_v41  ;;  %v3384_v28 = vsub.f32 %v3119_v33, %v1452_v60  ;;  %v1419_v5 = vmul.f32 %v1381_v53, %v2976_v52  ;;  %v1451_v22 = vmul.f32 %v1381_v53, %v2974_v51  ;;  %2548 = vmatprep.mubr.msk.f32.mxu0 %vm452_vm0, %v1515_v12 }
 0x361   : > { %v1484_v20 = vmul.f32 %v3244_v11, %v3375_v27  ;;  %v1501_v23 = vmul.f32 %v3246_v29, %v3378_v58  ;;  %v1396_v46 = vadd.f32 %v2531_v9, %v3238_v2  ;;  %v1390_v38 = vpop.f32.mrf.mxu1  ;;  %v1518_v41 = vadd.f32 %v1502_v35, %v1485_v63 }
 0x362   : > { %v1487_v33 = vmul.f32 %v3244_v11, %v3381_v15  ;;  %v1504_v45 = vmul.f32 %v3246_v29, %v3384_v28  ;;  %v3399_v57 = vadd.f32 %v1419_v5, %v3133_v0  ;;  %v3402_v49 = vsub.f32 %v3136_v24, %v1451_v22  ;;  %2549 = vmatmul.mubr.msk.f32.gmra.mxu0 %vm452_vm0, %v1516_v26 }
 0x363   : > { %v1422_v50 = vmul.f32 %v1396_v46, %v2976_v52  ;;  %v1454_v17 = vmul.f32 %v1396_v46, %v2974_v51  ;;  %v1391_v44 = vadd.f32 %v3238_v2, %v1390_v38  ;;  %v2534_v21 = vpop.f32.mrf.mxu1  ;;  %v1517_v61 = vadd.f32 %v1501_v23, %v1484_v20 }
 0x364   : > { %v1486_v32 = vmul.f32 %v3244_v11, %v3399_v57  ;;  %v1503_v0 = vmul.f32 %v3246_v29, %v3402_v49  ;;  %v1406_v18 = vadd.f32 %v2534_v21, %v3238_v2  ;;  %v1520_v24 = vadd.f32 %v1504_v45, %v1487_v33 }
 0x365   : > { %v3414_v34 = vadd.f32 %v1422_v50, %v3139_v30  ;;  %v3417_v26 = vsub.f32 %v3142_v25, %v1454_v17  ;;  %v1421_v59 = vmul.f32 %v1391_v44, %v2976_v52  ;;  %v1453_v60 = vmul.f32 %v1391_v44, %v2974_v51  ;;  %2551 = vmatprep.mubr.msk.f32.mxu0 %vm452_vm0, %v1517_v61  ;;  %v1400_v53 = vpop.f32.mrf.mxu1  ;;  %v2260_v50 = vld [vmem:[%s3656_s5 + $0x2] ss:$0 sm:$0xff] }
 0x366   : > { %v1424_v12 = vmul.f32 %v1406_v18, %v2976_v52  ;;  %v1456_v63 = vmul.f32 %v1406_v18, %v2974_v51  ;;  %v1401_v35 = vadd.f32 %v3238_v2, %v1400_v53  ;;  %2552 = vmatmul.mubr.msk.f32.gmra.mxu0 %vm452_vm0, %v1518_v41  ;;  %v1519_v30 = vadd.f32 %v1503_v0, %v1486_v32 }
 0x367   : > { %v1489_v25 = vmul.f32 %v3244_v11, %v3414_v34  ;;  %v1506_v9 = vmul.f32 %v3246_v29, %v3417_v26  ;;  %v3431_v5 = vadd.f32 %v1421_v59, %v3153_v8  ;;  %v3434_v22 = vsub.f32 %v3156_v10, %v1453_v60 }
 0x368   : > { %v3437_v20 = vadd.f32 %v1424_v12, %v3171_v36  ;;  %v3440_v2 = vsub.f32 %v3174_v40, %v1456_v63  ;;  %v1423_v23 = vmul.f32 %v1401_v35, %v2976_v52  ;;  %v1455_v46 = vmul.f32 %v1401_v35, %v2974_v51  ;;  %2554 = vmatprep.mubr.msk.f32.mxu0 %vm452_vm0, %v1519_v30 }
 0x369   : > { %v1488_v38 = vmul.f32 %v3244_v11, %v3431_v5  ;;  %v1505_v8 = vmul.f32 %v3246_v29, %v3434_v22  ;;  %v1522_v52 = vadd.f32 %v1506_v9, %v1489_v25 }
 0x36a   : > { %v3450_v10 = vadd.f32 %v1423_v23, %v3181_v16  ;;  %v3453_v36 = vsub.f32 %v3184_v37, %v1455_v46  ;;  %2555 = vmatmul.mubr.msk.f32.gmra.mxu0 %vm452_vm0, %v1520_v24  ;;  %v1491_v51 = vmul.f32 %v3244_v11, %v3437_v20  ;;  %v1508_v41 = vmul.f32 %v3246_v29, %v3440_v2 }
 0x36b   : > { %v1521_v40 = vadd.f32 %v1505_v8, %v1488_v38 }
 0x36c   : > { %v1490_v33 = vmul.f32 %v3244_v11, %v3450_v10  ;;  %v1507_v16 = vmul.f32 %v3246_v29, %v3453_v36  ;;  %v1524_v45 = vadd.f32 %v1508_v41, %v1491_v51 }
 0x36d   : > { %2557 = vmatprep.mubr.msk.f32.mxu0 %vm452_vm0, %v1521_v40 }
 0x36e   : > { %2558 = vmatmul.mubr.msk.f32.gmra.mxu0 %vm452_vm0, %v1522_v52  ;;  %v1523_v37 = vadd.f32 %v1507_v16, %v1490_v33 }
 0x370   : > { %2560 = vmatprep.mubr.msk.f32.mxu0 %vm452_vm0, %v1523_v37 }
 0x372   : > { %2561 = vmatmul.mubr.msk.f32.gmra.mxu0 %vm452_vm0, %v1524_v45 }
 0x414   : > { %v2541_v17 = vpop.f32.mrf.mxu0 }
 0x415   : > { %v1656_v44 = vadd.f32 %v2541_v17, %v2260_v50 }
 0x416   : > { %v1650_v21 = vpop.f32.mrf.mxu0 }
 0x417   : > { %v1651_v61 = vadd.f32 %v2260_v50, %v1650_v21  ;;  %v1730_v18 = vand.u32 2147483647, %v1656_v44 }
 0x419   : > { %v1729_v32 = vand.u32 2147483647, %v1651_v61  ;;  %v2544_v0 = vpop.f32.mrf.mxu0 }
 0x41a   : > { %v1666_v24 = vadd.f32 %v2544_v0, %v2260_v50 }
 0x41b   : > { %v1660_v59 = vpop.f32.mrf.mxu0  ;;  %2571 = vmatprep.mubr.msk.f32.mxu1 %vm673_vm1, %v1729_v32 }
 0x41c   : > { %v1661_v60 = vadd.f32 %v2260_v50, %v1660_v59  ;;  %2572 = vmatmul.mubr.msk.f32.vlgmr.msra.gmra.mxu1 %vm673_vm1, %v1730_v18  ;;  %v1732_v63 = vand.u32 2147483647, %v1666_v24 }
 0x41e   : > { %v1731_v53 = vand.u32 2147483647, %v1661_v60  ;;  %v2547_v12 = vpop.f32.mrf.mxu0 }
 0x41f   : > { %v1676_v35 = vadd.f32 %v2547_v12, %v2260_v50 }
 0x420   : > { %v1670_v30 = vpop.f32.mrf.mxu0  ;;  %2574 = vmatprep.mubr.msk.f32.mxu1 %vm673_vm1, %v1731_v53 }
 0x421   : > { %v1671_v25 = vadd.f32 %v2260_v50, %v1670_v30  ;;  %2575 = vmatmul.mubr.msk.f32.gmra.mxu1 %vm673_vm1, %v1732_v63  ;;  %v1734_v46 = vand.u32 2147483647, %v1676_v35 }
 0x422   : > { %v2550_v9 = vpop.f32.mrf.mxu0 }
 0x423   : > { %v1733_v23 = vand.u32 2147483647, %v1671_v25  ;;  %v1686_v38 = vadd.f32 %v2550_v9, %v2260_v50 }
 0x424   : > { %v1680_v8 = vpop.f32.mrf.mxu0 }
 0x425   : > { %v1681_v40 = vadd.f32 %v2260_v50, %v1680_v8  ;;  %2577 = vmatprep.mubr.msk.f32.mxu1 %vm673_vm1, %v1733_v23  ;;  %v1736_v41 = vand.u32 2147483647, %v1686_v38  ;;  %v3490_v38 = vld [vmem:[%s3657_s6 + $0x2] ss:$0 sm:$0xff] }
 0x426   : > { %v2553_v52 = vpop.f32.mrf.mxu0  ;;  %2578 = vmatmul.mubr.msk.f32.gmra.mxu1 %vm673_vm1, %v1734_v46 }
 0x427   : > { %v1735_v51 = vand.u32 2147483647, %v1681_v40  ;;  %v1696_v33 = vadd.f32 %v2553_v52, %v2260_v50 }
 0x428   : > { %v1690_v16 = vpop.f32.mrf.mxu0 }
 0x429   : > { %v1691_v37 = vadd.f32 %v2260_v50, %v1690_v16  ;;  %2580 = vmatprep.mubr.msk.f32.mxu1 %vm673_vm1, %v1735_v51  ;;  %v1738_v44 = vand.u32 2147483647, %v1696_v33 }
 0x42a   : > { %v2556_v45 = vpop.f32.mrf.mxu0  ;;  %2581 = vmatmul.mubr.msk.f32.gmra.mxu1 %vm673_vm1, %v1736_v41 }
 0x42b   : > { %v1737_v17 = vand.u32 2147483647, %v1691_v37  ;;  %v1706_v21 = vadd.f32 %v2556_v45, %v2260_v50 }
 0x42c   : > { %v1700_v61 = vpop.f32.mrf.mxu0 }
 0x42d   : > { %v1701_v32 = vadd.f32 %v2260_v50, %v1700_v61  ;;  %2583 = vmatprep.mubr.msk.f32.mxu1 %vm673_vm1, %v1737_v17  ;;  %v1740_v24 = vand.u32 2147483647, %v1706_v21 }
 0x42e   : > { %v2559_v0 = vpop.f32.mrf.mxu0  ;;  %2584 = vmatmul.mubr.msk.f32.gmra.mxu1 %vm673_vm1, %v1738_v44 }
 0x42f   : > { %v1739_v18 = vand.u32 2147483647, %v1701_v32  ;;  %v1716_v59 = vadd.f32 %v2559_v0, %v2260_v50 }
 0x430   : > { %v1710_v60 = vpop.f32.mrf.mxu0 }
 0x431   : > { %v1711_v53 = vadd.f32 %v2260_v50, %v1710_v60  ;;  %2586 = vmatprep.mubr.msk.f32.mxu1 %vm673_vm1, %v1739_v18  ;;  %v1742_v35 = vand.u32 2147483647, %v1716_v59 }
 0x432   : > { %v2562_v12 = vpop.f32.mrf.mxu0  ;;  %2587 = vmatmul.mubr.msk.f32.gmra.mxu1 %vm673_vm1, %v1740_v24 }
 0x433   : > { %v1741_v63 = vand.u32 2147483647, %v1711_v53  ;;  %v1726_v30 = vadd.f32 %v2562_v12, %v2260_v50 }
 0x434   : > { %v1720_v25 = vpop.f32.mrf.mxu0 }
 0x435   : > { %v1721_v9 = vadd.f32 %v2260_v50, %v1720_v25  ;;  %2589 = vmatprep.mubr.msk.f32.mxu1 %vm673_vm1, %v1741_v63  ;;  %v1744_v46 = vand.u32 2147483647, %v1726_v30 }
 0x436   : > { %2590 = vmatmul.mubr.msk.f32.gmra.mxu1 %vm673_vm1, %v1742_v35 }
 0x437   : > { %v1743_v23 = vand.u32 2147483647, %v1721_v9 }
 0x439   : > { %2592 = vmatprep.mubr.msk.f32.mxu1 %vm673_vm1, %v1743_v23 }
 0x43a   : > { %2593 = vmatmul.mubr.msk.f32.gmra.mxu1 %vm673_vm1, %v1744_v46 }
 0x4dc   : > { %v2573_v8 = vpop.f32.mrf.mxu1 }
 0x4dd   : > { %v1878_v40 = vadd.f32 %v2573_v8, %v3490_v38 }
 0x4de   : > { %v1872_v52 = vpop.f32.mrf.mxu1 }
 0x4df   : > { %v1952_v50 = vmul.f32 %v1878_v40, %v3246_v29  ;;  %v1984_v51 = vmul.f32 %v1878_v40, %v3244_v11  ;;  %v1873_v41 = vadd.f32 %v3490_v38, %v1872_v52 }
 0x4e1   : > { %v1968_v33 = vadd.f32 %v1952_v50, %v3249_v1  ;;  %v2000_v16 = vsub.f32 %v3252_v47, %v1984_v51  ;;  %v1951_v37 = vmul.f32 %v1873_v41, %v3246_v29  ;;  %v1983_v45 = vmul.f32 %v1873_v41, %v3244_v11  ;;  %v2576_v17 = vpop.f32.mrf.mxu1 }
 0x4e2   : > { %v1888_v44 = vadd.f32 %v2576_v17, %v3490_v38 }
 0x4e3   : > { %2016 = vst.msk [vmem:[%s3500_s17 + $0x8] sm:$0xff] %vm452_vm0, %v1968_v33  ;;  %2032 = vst.msk [vmem:[%s3506_s20 + $0x8] sm:$0xff] %vm452_vm0, %v2000_v16  ;;  %v1967_v21 = vadd.f32 %v1951_v37, %v3262_v3  ;;  %v1999_v61 = vsub.f32 %v3265_v54, %v1983_v45  ;;  %v1882_v1 = vpop.f32.mrf.mxu1 }
 0x4e4   : > { %v1954_v47 = vmul.f32 %v1888_v44, %v3246_v29  ;;  %v1986_v32 = vmul.f32 %v1888_v44, %v3244_v11  ;;  %v1883_v0 = vadd.f32 %v3490_v38, %v1882_v1 }
 0x4e5   : > { %2015 = vst.msk [vmem:[%s3500_s17] sm:$0xff] %vm452_vm0, %v1967_v21  ;;  %2031 = vst.msk [vmem:[%s3506_s20] sm:$0xff] %vm452_vm0, %v1999_v61 }
 0x4e6   : > { %v1970_v18 = vadd.f32 %v1954_v47, %v3275_v7  ;;  %v2002_v24 = vsub.f32 %v3278_v6, %v1986_v32  ;;  %v1953_v3 = vmul.f32 %v1883_v0, %v3246_v29  ;;  %v1985_v54 = vmul.f32 %v1883_v0, %v3244_v11  ;;  %v2579_v59 = vpop.f32.mrf.mxu1 }
 0x4e7   : > { %v1898_v60 = vadd.f32 %v2579_v59, %v3490_v38 }
 0x4e8   : > { %2018 = vst.msk [vmem:[%s3500_s17 + $0x18] sm:$0xff] %vm452_vm0, %v1970_v18  ;;  %2034 = vst.msk [vmem:[%s3506_s20 + $0x18] sm:$0xff] %vm452_vm0, %v2002_v24  ;;  %v1969_v53 = vadd.f32 %v1953_v3, %v3288_v31  ;;  %v2001_v12 = vsub.f32 %v3291_v4, %v1985_v54  ;;  %v1892_v7 = vpop.f32.mrf.mxu1 }
 0x4e9   : > { %v1956_v6 = vmul.f32 %v1898_v60, %v3246_v29  ;;  %v1988_v63 = vmul.f32 %v1898_v60, %v3244_v11  ;;  %v1893_v35 = vadd.f32 %v3490_v38, %v1892_v7 }
 0x4ea   : > { %2017 = vst.msk [vmem:[%s3500_s17 + $0x10] sm:$0xff] %vm452_vm0, %v1969_v53  ;;  %2033 = vst.msk [vmem:[%s3506_s20 + $0x10] sm:$0xff] %vm452_vm0, %v2001_v12  ;;  %v2582_v30 = vpop.f32.mrf.mxu1 }
 0x4eb   : > { %v1972_v25 = vadd.f32 %v1956_v6, %v3304_v48  ;;  %v2004_v31 = vsub.f32 %v3307_v19, %v1988_v63  ;;  %v1955_v4 = vmul.f32 %v1893_v35, %v3246_v29  ;;  %v1987_v9 = vmul.f32 %v1893_v35, %v3244_v11 }
 0x4ec   : > { %v1908_v23 = vadd.f32 %v2582_v30, %v3490_v38  ;;  %v1902_v46 = vpop.f32.mrf.mxu1 }
 0x4ed   : > { %2020 = vst.msk [vmem:[%s3500_s17 + $0x28] sm:$0xff] %vm452_vm0, %v1972_v25  ;;  %2036 = vst.msk [vmem:[%s3506_s20 + $0x28] sm:$0xff] %vm452_vm0, %v2004_v31  ;;  %v1971_v8 = vadd.f32 %v1955_v4, %v3319_v56  ;;  %v2003_v40 = vsub.f32 %v3322_v39, %v1987_v9  ;;  %v1903_v52 = vadd.f32 %v3490_v38, %v1902_v46 }
 0x4ee   : > { %v1958_v48 = vmul.f32 %v1908_v23, %v3246_v29  ;;  %v1990_v19 = vmul.f32 %v1908_v23, %v3244_v11  ;;  %v2585_v50 = vpop.f32.mrf.mxu1 }
 0x4ef   : > { %2019 = vst.msk [vmem:[%s3500_s17 + $0x20] sm:$0xff] %vm452_vm0, %v1971_v8  ;;  %2035 = vst.msk [vmem:[%s3506_s20 + $0x20] sm:$0xff] %vm452_vm0, %v2003_v40  ;;  %v1957_v51 = vmul.f32 %v1903_v52, %v3246_v29  ;;  %v1989_v56 = vmul.f32 %v1903_v52, %v3244_v11  ;;  %v1918_v39 = vadd.f32 %v2585_v50, %v3490_v38 }
 0x4f0   : > { %v1974_v41 = vadd.f32 %v1958_v48, %v3325_v42  ;;  %v2006_v33 = vsub.f32 %v3328_v43, %v1990_v19  ;;  %v1912_v16 = vpop.f32.mrf.mxu1 }
 0x4f1   : > { %v1973_v37 = vadd.f32 %v1957_v51, %v3344_v13  ;;  %v2005_v45 = vsub.f32 %v3347_v14, %v1989_v56  ;;  %v1960_v17 = vmul.f32 %v1918_v39, %v3246_v29  ;;  %v1992_v44 = vmul.f32 %v1918_v39, %v3244_v11 }
 0x4f2   : > { %2022 = vst.msk [vmem:[%s3500_s17 + $0x38] sm:$0xff] %vm452_vm0, %v1974_v41  ;;  %2038 = vst.msk [vmem:[%s3506_s20 + $0x38] sm:$0xff] %vm452_vm0, %v2006_v33  ;;  %v1913_v21 = vadd.f32 %v3490_v38, %v1912_v16  ;;  %v2588_v42 = vpop.f32.mrf.mxu1 }
 0x4f3   : > { %2021 = vst.msk [vmem:[%s3500_s17 + $0x30] sm:$0xff] %vm452_vm0, %v1973_v37  ;;  %2037 = vst.msk [vmem:[%s3506_s20 + $0x30] sm:$0xff] %vm452_vm0, %v2005_v45  ;;  %v1976_v43 = vadd.f32 %v1960_v17, %v3358_v62  ;;  %v2008_v13 = vsub.f32 %v3361_v55, %v1992_v44  ;;  %v1928_v14 = vadd.f32 %v2588_v42, %v3490_v38 }
 0x4f4   : > { %v1959_v61 = vmul.f32 %v1913_v21, %v3246_v29  ;;  %v1991_v1 = vmul.f32 %v1913_v21, %v3244_v11  ;;  %v1922_v47 = vpop.f32.mrf.mxu1 }
 0x4f5   : > { %2024 = vst.msk [vmem:[%s3500_s17 + $0x48] sm:$0xff] %vm452_vm0, %v1976_v43  ;;  %2040 = vst.msk [vmem:[%s3506_s20 + $0x48] sm:$0xff] %vm452_vm0, %v2008_v13  ;;  %v1962_v32 = vmul.f32 %v1928_v14, %v3246_v29  ;;  %v1994_v62 = vmul.f32 %v1928_v14, %v3244_v11  ;;  %v1923_v55 = vadd.f32 %v3490_v38, %v1922_v47 }
 0x4f6   : > { %v1975_v0 = vadd.f32 %v1959_v61, %v3375_v27  ;;  %v2007_v18 = vsub.f32 %v3378_v58, %v1991_v1  ;;  %v2591_v24 = vpop.f32.mrf.mxu1 }
 0x4f7   : > { %v1978_v3 = vadd.f32 %v1962_v32, %v3381_v15  ;;  %v2010_v54 = vsub.f32 %v3384_v28, %v1994_v62  ;;  %v1961_v59 = vmul.f32 %v1923_v55, %v3246_v29  ;;  %v1993_v60 = vmul.f32 %v1923_v55, %v3244_v11 }
 0x4f8   : > { %2023 = vst.msk [vmem:[%s3500_s17 + $0x40] sm:$0xff] %vm452_vm0, %v1975_v0  ;;  %2039 = vst.msk [vmem:[%s3506_s20 + $0x40] sm:$0xff] %vm452_vm0, %v2007_v18  ;;  %v1938_v53 = vadd.f32 %v2591_v24, %v3490_v38  ;;  %v1932_v27 = vpop.f32.mrf.mxu1 }
 0x4f9   : > { %2026 = vst.msk [vmem:[%s3500_s17 + $0x58] sm:$0xff] %vm452_vm0, %v1978_v3  ;;  %2042 = vst.msk [vmem:[%s3506_s20 + $0x58] sm:$0xff] %vm452_vm0, %v2010_v54  ;;  %v1977_v58 = vadd.f32 %v1961_v59, %v3399_v57  ;;  %v2009_v15 = vsub.f32 %v3402_v49, %v1993_v60  ;;  %v1933_v28 = vadd.f32 %v3490_v38, %v1932_v27 }
 0x4fa   : > { %v1964_v12 = vmul.f32 %v1938_v53, %v3246_v29  ;;  %v1996_v7 = vmul.f32 %v1938_v53, %v3244_v11  ;;  %v2594_v6 = vpop.f32.mrf.mxu1 }
 0x4fb   : > { %2025 = vst.msk [vmem:[%s3500_s17 + $0x50] sm:$0xff] %vm452_vm0, %v1977_v58  ;;  %2041 = vst.msk [vmem:[%s3506_s20 + $0x50] sm:$0xff] %vm452_vm0, %v2009_v15  ;;  %v1963_v63 = vmul.f32 %v1933_v28, %v3246_v29  ;;  %v1995_v57 = vmul.f32 %v1933_v28, %v3244_v11  ;;  %v1948_v49 = vadd.f32 %v2594_v6, %v3490_v38 }
 0x4fc   : > { %v1980_v35 = vadd.f32 %v1964_v12, %v3414_v34  ;;  %v2012_v30 = vsub.f32 %v3417_v26, %v1996_v7  ;;  %v1942_v25 = vpop.f32.mrf.mxu1 }
 0x4fd   : > { %v1979_v31 = vadd.f32 %v1963_v63, %v3431_v5  ;;  %v2011_v4 = vsub.f32 %v3434_v22, %v1995_v57  ;;  %v1966_v9 = vmul.f32 %v1948_v49, %v3246_v29  ;;  %v1998_v23 = vmul.f32 %v1948_v49, %v3244_v11 }
 0x4fe   : > { %2028 = vst.msk [vmem:[%s3500_s17 + $0x68] sm:$0xff] %vm452_vm0, %v1980_v35  ;;  %2044 = vst.msk [vmem:[%s3506_s20 + $0x68] sm:$0xff] %vm452_vm0, %v2012_v30  ;;  %v1943_v34 = vadd.f32 %v3490_v38, %v1942_v25 }
 0x4ff   : > { %2027 = vst.msk [vmem:[%s3500_s17 + $0x60] sm:$0xff] %vm452_vm0, %v1979_v31  ;;  %2043 = vst.msk [vmem:[%s3506_s20 + $0x60] sm:$0xff] %vm452_vm0, %v2011_v4  ;;  %v1982_v26 = vadd.f32 %v1966_v9, %v3437_v20  ;;  %v2014_v5 = vsub.f32 %v3440_v2, %v1998_v23 }
 0x500   : > { %v1965_v22 = vmul.f32 %v1943_v34, %v3246_v29  ;;  %v1997_v46 = vmul.f32 %v1943_v34, %v3244_v11 }
 0x501   : > { %2030 = vst.msk [vmem:[%s3500_s17 + $0x78] sm:$0xff] %vm452_vm0, %v1982_v26  ;;  %2046 = vst.msk [vmem:[%s3506_s20 + $0x78] sm:$0xff] %vm452_vm0, %v2014_v5 }
 0x502   : > { %v1981_v8 = vadd.f32 %v1965_v22, %v3450_v10  ;;  %v2013_v38 = vsub.f32 %v3453_v36, %v1997_v46 }
 0x504   : > { %2029 = vst.msk [vmem:[%s3500_s17 + $0x70] sm:$0xff] %vm452_vm0, %v1981_v8  ;;  %2045 = vst.msk [vmem:[%s3506_s20 + $0x70] sm:$0xff] %vm452_vm0, %v2013_v38 }
 0x505 PF: > { %s20_s27 = sadd.s32 1, %s2639_s27  }
 0x506   : > { %p17_p1 = scmp.ge.s32.totalorder %s20_s27, 4  }
 0x508   :  { %19 = sbr.rel (!%p17_p1) target bundleno = 1 (0x1), region = 106 }
 0x50d   :  { %2086 = vsyncpa [#allocation3], 1 }
 0x50e   :  { %2088 = vsyncpa [#allocation3 + $0x1], 1 }

</bundles_post_ra>
